<compile_context>
chip_gen: v5e
topology: v5e:2x2
jax: 0.10.0
libtpu: 0.0.40
codegen_flags: <defaults>
</compile_context>

<pallas_src>
import functools
import math

import jax
import jax.numpy as jnp
from jax.experimental import pallas as pl
from jax.experimental.pallas import tpu as pltpu


# ----------------------------------------------------------------------------
# Fused per-branch kernel:
#   q/k/v projections -> per-head masked attention over the folded batch ->
#   output projection -> residual + LayerNorm (x2 MHA modules) ->
#   feature concat -> adaptive max/avg pool -> post linear + ReLU
# ----------------------------------------------------------------------------
def _fused_branch_kernel(q_ref, kv1_ref, kv2_ref, mask_ref, perm_ref,
                         wq_ref, wkv1_ref, wkv2_ref, wfc_ref, ln_ref,
                         wpost_ref, bpost_ref, o_ref, *,
                         n_head, d_k, d_v, d_model, pool_dim):
    H, D = n_head, d_model
    q_in = q_ref[0].astype(jnp.float32)      # (B*L, D)  branch query input
    kv1_in = kv1_ref[0].astype(jnp.float32)  # (B*L, D)  key/value input, MHA #1
    kv2_in = kv2_ref[0].astype(jnp.float32)  # (B*L, D)  key/value input, MHA #2
    neg_mask = mask_ref[...]                 # (BL, BL) block-diag additive mask
    perm = perm_ref[...]                     # (2D, 2D) pooling permutation

    # Q heads of BOTH MHA modules in one matmul (1/temperature pre-folded).
    q_proj = jnp.dot(q_in, wq_ref[0].astype(jnp.float32),
                     preferred_element_type=jnp.float32)        # (BL, 2*H*d_k)

    ln = ln_ref[0].astype(jnp.float32)       # (4, D): [gamma1, beta1, gamma2, beta2]
    wfc = wfc_ref[0].astype(jnp.float32)     # (2*H*d_v, D): [fc1 ; fc2]

    def mha(q_heads, kv_in, wkv, w_out, gamma, beta):
        # q_heads: (BL, H*d_k) pre-scaled; kv_in: (BL, D)
        kvp = jnp.dot(kv_in, wkv, preferred_element_type=jnp.float32)  # (BL, H*(d_k+d_v))
        k_all = kvp[:, :H * d_k]
        v_all = kvp[:, H * d_k:]
        heads = []
        for h in range(H):                                      # tiny static unroll
            qh = q_heads[:, h * d_k:(h + 1) * d_k]
            kh = k_all[:, h * d_k:(h + 1) * d_k]
            vh = v_all[:, h * d_v:(h + 1) * d_v]
            s = jax.lax.dot_general(qh, kh, (((1,), (1,)), ((), ())),
                                    preferred_element_type=jnp.float32)
            s = s + neg_mask
            s = s - jnp.max(s, axis=-1, keepdims=True)
            p = jnp.exp(s)
            # TODO(synk): attention dropout treated as identity (eval mode).
            p = p * pl.reciprocal(jnp.sum(p, axis=-1, keepdims=True), approx=True)
            heads.append(jnp.dot(p, vh, preferred_element_type=jnp.float32))
        o = jnp.concatenate(heads, axis=-1)                     # (BL, H*d_v)
        y = jnp.dot(o, w_out, preferred_element_type=jnp.float32) + q_in  # + residual
        mean = jnp.mean(y, axis=-1, keepdims=True)
        var = jnp.mean((y - mean) ** 2, axis=-1, keepdims=True)
        return (y - mean) * jax.lax.rsqrt(var + 1e-6) * gamma + beta

    y1 = mha(q_proj[:, :H * d_k], kv1_in, wkv1_ref[0].astype(jnp.float32),
             wfc[:H * d_v, :], ln[0:1, :], ln[1:2, :])
    y2 = mha(q_proj[:, H * d_k:], kv2_in, wkv2_ref[0].astype(jnp.float32),
             wfc[H * d_v:, :], ln[2:3, :], ln[3:4, :])

    merged = jnp.concatenate([y1, y2], axis=-1)                 # (BL, 2*D)
    two_d = 2 * D
    win = two_d // pool_dim                                     # pooling window width

    # Adaptive pooling: permutation matmul regroups window elements so group k
    # (lanes [k*P, (k+1)*P)) holds the k-th element of every window; then a
    # tiny max / sum over the `win` groups gives max-pool / avg-pool exactly.
    shuf = jnp.dot(merged, perm, preferred_element_type=jnp.float32)  # (BL, 2*D)

    mx = shuf[:, :pool_dim]
    sm = shuf[:, :pool_dim]
    for k in range(1, win):
        blk = shuf[:, k * pool_dim:(k + 1) * pool_dim]
        mx = jnp.maximum(mx, blk)
        sm = sm + blk
    pooled = jnp.concatenate([mx, sm * (1.0 / win)], axis=-1)   # (BL, 2*pool_dim)

    out = jnp.dot(pooled, wpost_ref[0].astype(jnp.float32),
                  preferred_element_type=jnp.float32) + bpost_ref[0].astype(jnp.float32)
    # TODO(synk): F.dropout(p=0.2) after ReLU treated as identity (eval mode).
    o_ref[0] = jnp.maximum(out, 0.0).astype(o_ref.dtype)


# ----------------------------------------------------------------------------
# One-time parameter packing (outside jit): transpose to (in, out), pack
# Wq|Wq, Wk|Wv, fc1;fc2, fold 1/temperature into Wq, stack over the 3 branches
# in output order [v, a, t].
# ----------------------------------------------------------------------------
def prepare_params(raw, *, d_k):
    inv_temp = 1.0 / math.sqrt(d_k)
    branches = [("vt", "va", "post_v"), ("at", "av", "post_a"), ("ta", "tv", "post_t")]
    wq, wkv1, wkv2, wfc, ln, wpost, bpost = [], [], [], [], [], [], []
    for m1, m2, pp in branches:
        p1, p2, pst = raw[m1], raw[m2], raw[pp]
        wq.append(jnp.concatenate([p1["wq"].T, p2["wq"].T], axis=1) * inv_temp)
        wkv1.append(jnp.concatenate([p1["wk"].T, p1["wv"].T], axis=1))
        wkv2.append(jnp.concatenate([p2["wk"].T, p2["wv"].T], axis=1))
        wfc.append(jnp.concatenate([p1["wfc"].T, p2["wfc"].T], axis=0))
        ln.append(jnp.stack([p1["gamma"], p1["beta"], p2["gamma"], p2["beta"]]))
        wpost.append(pst["w"].T)
        bpost.append(pst["b"].reshape(1, -1))
    stk = lambda xs: jnp.stack(xs, axis=0)
    return {"wq": stk(wq), "wkv1": stk(wkv1), "wkv2": stk(wkv2), "wfc": stk(wfc),
            "ln": stk(ln), "wpost": stk(wpost), "bpost": stk(bpost)}


# ----------------------------------------------------------------------------
# Full subModel forward: one pallas_call over 3 branches.
# ----------------------------------------------------------------------------
def sub_model_forward(t, a, v, prepped, *, n_head, d_k, d_v, d_model, pool_dim):
    B, L, D = t.shape
    assert D == d_model
    assert (2 * d_model) % pool_dim == 0, "pooling window must divide evenly"
    BL = B * L
    P2 = 2 * pool_dim
    two_d = 2 * d_model
    win = two_d // pool_dim

    tf = t.reshape(BL, D)
    af = a.reshape(BL, D)
    vf = v.reshape(BL, D)
    # branch order matches the final concat: [merge_v, merge_a, merge_t]
    q_stack = jnp.stack([vf, af, tf])
    kv1_stack = jnp.stack([tf, tf, af])
    kv2_stack = jnp.stack([af, vf, vf])

    # Block-diagonal (per-example) additive mask: batch is folded into the M/N
    # dims of the score matmul, rows/cols from different examples must not
    # attend to each other.
    idx = jnp.arange(BL, dtype=jnp.int32)
    neg_mask = jnp.where((idx[:, None] // L) == (idx[None, :] // L),
                         0.0, -1e30).astype(jnp.float32)
    # Exact 0/1 permutation: shuf[:, k*P + j] = merged[:, j*win + k]
    r = jnp.arange(two_d, dtype=jnp.int32)
    c = jnp.arange(two_d, dtype=jnp.int32)
    perm = (r[:, None] == ((c[None, :] % pool_dim) * win + c[None, :] // pool_dim)
            ).astype(jnp.float32)

    kernel = functools.partial(_fused_branch_kernel, n_head=n_head, d_k=d_k,
                               d_v=d_v, d_model=d_model, pool_dim=pool_dim)
    hdk2 = 2 * n_head * d_k
    hkv = n_head * (d_k + d_v)
    hdv2 = 2 * n_head * d_v

    out = pl.pallas_call(
        kernel,
        out_shape=jax.ShapeDtypeStruct((3, BL, P2), t.dtype),
        grid=(3,),
        in_specs=[
            pl.BlockSpec((1, BL, D), lambda b: (b, 0, 0)),       # q
            pl.BlockSpec((1, BL, D), lambda b: (b, 0, 0)),       # kv input, MHA 1
            pl.BlockSpec((1, BL, D), lambda b: (b, 0, 0)),       # kv input, MHA 2
            pl.BlockSpec((BL, BL), lambda b: (0, 0)),            # block-diag mask
            pl.BlockSpec((two_d, two_d), lambda b: (0, 0)),      # pooling permutation
            pl.BlockSpec((1, D, hdk2), lambda b: (b, 0, 0)),     # packed Wq (both MHAs)
            pl.BlockSpec((1, D, hkv), lambda b: (b, 0, 0)),      # packed Wk|Wv, MHA 1
            pl.BlockSpec((1, D, hkv), lambda b: (b, 0, 0)),      # packed Wk|Wv, MHA 2
            pl.BlockSpec((1, hdv2, D), lambda b: (b, 0, 0)),     # packed fc1;fc2
            pl.BlockSpec((1, 4, D), lambda b: (b, 0, 0)),        # LN gammas/betas
            pl.BlockSpec((1, P2, P2), lambda b: (b, 0, 0)),      # post_pool weight
            pl.BlockSpec((1, 1, P2), lambda b: (b, 0, 0)),       # post_pool bias
        ],
        out_specs=pl.BlockSpec((1, BL, P2), lambda b: (b, 0, 0)),
        compiler_params=pltpu.CompilerParams(
            dimension_semantics=("parallel",),
            vmem_limit_bytes=32 * 1024 * 1024),
    )(q_stack, kv1_stack, kv2_stack, neg_mask, perm,
      prepped["wq"], prepped["wkv1"], prepped["wkv2"], prepped["wfc"],
      prepped["ln"], prepped["wpost"], prepped["bpost"])

    # (3, B*L, 2P) -> (B, L, 3*2P), branch order already [merge_v, merge_a, merge_t]
    return out.reshape(3, B, L, P2).transpose(1, 2, 0, 3).reshape(B, L, 3 * P2)


# ----------------------------------------------------------------------------
# Deterministic synthetic parameters (PyTorch layout)
# ----------------------------------------------------------------------------
def init_params(key, n_head, d_model, d_k, d_v, pool_dim):
    def lin(k, out_f, in_f):
        bound = 1.0 / math.sqrt(in_f)
        return jax.random.uniform(k, (out_f, in_f), jnp.float32, -bound, bound)

    params = {}
    keys = jax.random.split(key, 32)
    ki = iter(range(32))
    for name in ["ta", "tv", "at", "av", "vt", "va"]:
        params[name] = {
            "wq": lin(keys[next(ki)], n_head * d_k, d_model),
            "wk": lin(keys[next(ki)], n_head * d_k, d_model),
            "wv": lin(keys[next(ki)], n_head * d_v, d_model),
            "wfc": lin(keys[next(ki)], d_model, n_head * d_v),
            "gamma": jnp.ones((d_model,), jnp.float32),
            "beta": jnp.zeros((d_model,), jnp.float32),
        }
    for name in ["post_t", "post_a", "post_v"]:
        params[name] = {
            "w": lin(keys[next(ki)], pool_dim * 2, pool_dim * 2),
            "b": jax.random.uniform(keys[next(ki)], (pool_dim * 2,), jnp.float32,
                                    -1.0 / math.sqrt(pool_dim * 2),
                                    1.0 / math.sqrt(pool_dim * 2)),
        }
    return params


# ----------------------------------------------------------------------------
# Pure-JAX reference (mirrors the PyTorch module, eval mode) for a sanity check.
# ----------------------------------------------------------------------------
def _reference_forward(t, a, v, raw, *, n_head, d_k, d_v, pool_dim):
    def mha(q, k, v_in, p):
        B, Lq, D = q.shape
        temp = d_k ** 0.5
        qp = (q @ p["wq"].T).reshape(B, Lq, n_head, d_k).transpose(0, 2, 1, 3)
        kp = (k @ p["wk"].T).reshape(B, -1, n_head, d_k).transpose(0, 2, 1, 3)
        vp = (v_in @ p["wv"].T).reshape(B, -1, n_head, d_v).transpose(0, 2, 1, 3)
        s = (qp / temp) @ kp.transpose(0, 1, 3, 2)
        attn = jax.nn.softmax(s, axis=-1)
        o = (attn @ vp).transpose(0, 2, 1, 3).reshape(B, Lq, n_head * d_v)
        o = o @ p["wfc"].T + q
        mean = o.mean(-1, keepdims=True)
        var = ((o - mean) ** 2).mean(-1, keepdims=True)
        return (o - mean) / jnp.sqrt(var + 1e-6) * p["gamma"] + p["beta"]

    def pool(x):
        B, L, C = x.shape
        xs = x.reshape(B, L, pool_dim, C // pool_dim)
        return jnp.concatenate([xs.max(-1), xs.mean(-1)], axis=-1)

    def branch(q, k1, k2, p1, p2, pp):
        m = jnp.concatenate([mha(q, k1, k1, p1), mha(q, k2, k2, p2)], axis=-1)
        m = pool(m)
        return jax.nn.relu(m @ pp["w"].T + pp["b"])

    mv = branch(v, t, a, raw["vt"], raw["va"], raw["post_v"])
    ma = branch(a, t, v, raw["at"], raw["av"], raw["post_a"])
    mt = branch(t, a, v, raw["ta"], raw["tv"], raw["post_t"])
    return jnp.concatenate([mv, ma, mt], axis=-1)


if __name__ == "__main__":
    n_head, d_model, d_k, d_v, pool_dim = 2, 32, 8, 8, 16
    B, L = 2, 8

    key = jax.random.PRNGKey(0)
    k_t, k_a, k_v, k_p = jax.random.split(key, 4)
    t = jax.random.normal(k_t, (B, L, d_model), jnp.float32)
    a = jax.random.normal(k_a, (B, L, d_model), jnp.float32)
    v = jax.random.normal(k_v, (B, L, d_model), jnp.float32)

    raw_params = init_params(k_p, n_head, d_model, d_k, d_v, pool_dim)
    prepped = prepare_params(raw_params, d_k=d_k)        # one-time, outside jit

    fwd = jax.jit(functools.partial(sub_model_forward, n_head=n_head, d_k=d_k,
                                    d_v=d_v, d_model=d_model, pool_dim=pool_dim))
    out = fwd(t, a, v, prepped)
    jax.block_until_ready(out)
    assert out.shape == (B, L, pool_dim * 2 * 3), out.shape

    # Sanity check vs pure-JAX reference (loose tolerance absorbs MXU f32
    # precision and the approximate softmax reciprocal).
    ref = _reference_forward(t, a, v, raw_params, n_head=n_head, d_k=d_k,
                             d_v=d_v, pool_dim=pool_dim)
    max_err = float(jnp.max(jnp.abs(out - ref)))
    assert max_err < 5e-2, f"kernel/reference mismatch: max abs err {max_err}"

    print("KERNEL_OK")
</pallas_src>

<mosaic_0001>
module attributes {stable_mosaic.version = 11 : i64} {
  func.func @_fused_branch_kernel(%arg0: i32, %arg1: memref<1x16x32xf32, #tpu.memory_space<vmem>>, %arg2: memref<1x16x32xf32, #tpu.memory_space<vmem>>, %arg3: memref<1x16x32xf32, #tpu.memory_space<vmem>>, %arg4: memref<16x16xf32, #tpu.memory_space<vmem>>, %arg5: memref<64x64xf32, #tpu.memory_space<vmem>>, %arg6: memref<1x32x32xf32, #tpu.memory_space<vmem>>, %arg7: memref<1x32x32xf32, #tpu.memory_space<vmem>>, %arg8: memref<1x32x32xf32, #tpu.memory_space<vmem>>, %arg9: memref<1x32x32xf32, #tpu.memory_space<vmem>>, %arg10: memref<1x4x32xf32, #tpu.memory_space<vmem>>, %arg11: memref<1x32x32xf32, #tpu.memory_space<vmem>>, %arg12: memref<1x1x32xf32, #tpu.memory_space<vmem>>, %arg13: memref<1x16x32xf32, #tpu.memory_space<vmem>>) attributes {dimension_semantics = [#tpu.dimension_semantics<parallel>], iteration_bounds = array<i64: 3>, scalar_prefetch = 0 : i64, scratch_operands = 0 : i64, tpu.core_type = #tpu.core_type<tc>, window_params = [{transform_indices = @transform_0, window_bounds = array<i64: 1, 16, 32>}, {transform_indices = @transform_1, window_bounds = array<i64: 1, 16, 32>}, {transform_indices = @transform_2, window_bounds = array<i64: 1, 16, 32>}, {pipeline_mode = #tpu.pipeline_mode<synchronous>, transform_indices = @transform_3, window_bounds = array<i64: 16, 16>}, {pipeline_mode = #tpu.pipeline_mode<synchronous>, transform_indices = @transform_4, window_bounds = array<i64: 64, 64>}, {transform_indices = @transform_5, window_bounds = array<i64: 1, 32, 32>}, {transform_indices = @transform_6, window_bounds = array<i64: 1, 32, 32>}, {transform_indices = @transform_7, window_bounds = array<i64: 1, 32, 32>}, {transform_indices = @transform_8, window_bounds = array<i64: 1, 32, 32>}, {transform_indices = @transform_9, window_bounds = array<i64: 1, 4, 32>}, {transform_indices = @transform_10, window_bounds = array<i64: 1, 32, 32>}, {transform_indices = @transform_11, window_bounds = array<i64: 1, 1, 32>}, {transform_indices = @transform_12, window_bounds = array<i64: 1, 16, 32>}]} {
    %c0 = arith.constant 0 : index
    %c0_0 = arith.constant 0 : index
    %c0_1 = arith.constant 0 : index
    %0 = vector.load %arg1[%c0, %c0_0, %c0_1] : memref<1x16x32xf32, #tpu.memory_space<vmem>>, vector<1x16x32xf32>
    %1 = vector.shape_cast %0 : vector<1x16x32xf32> to vector<16x32xf32>
    %c0_2 = arith.constant 0 : index
    %c0_3 = arith.constant 0 : index
    %c0_4 = arith.constant 0 : index
    %2 = vector.load %arg2[%c0_2, %c0_3, %c0_4] : memref<1x16x32xf32, #tpu.memory_space<vmem>>, vector<1x16x32xf32>
    %3 = vector.shape_cast %2 : vector<1x16x32xf32> to vector<16x32xf32>
    %c0_5 = arith.constant 0 : index
    %c0_6 = arith.constant 0 : index
    %c0_7 = arith.constant 0 : index
    %4 = vector.load %arg3[%c0_5, %c0_6, %c0_7] : memref<1x16x32xf32, #tpu.memory_space<vmem>>, vector<1x16x32xf32>
    %5 = vector.shape_cast %4 : vector<1x16x32xf32> to vector<16x32xf32>
    %c0_8 = arith.constant 0 : index
    %c0_9 = arith.constant 0 : index
    %6 = vector.load %arg4[%c0_8, %c0_9] : memref<16x16xf32, #tpu.memory_space<vmem>>, vector<16x16xf32>
    %c0_10 = arith.constant 0 : index
    %c0_11 = arith.constant 0 : index
    %7 = vector.load %arg5[%c0_10, %c0_11] : memref<64x64xf32, #tpu.memory_space<vmem>>, vector<64x64xf32>
    %c0_12 = arith.constant 0 : index
    %c0_13 = arith.constant 0 : index
    %c0_14 = arith.constant 0 : index
    %8 = vector.load %arg6[%c0_12, %c0_13, %c0_14] : memref<1x32x32xf32, #tpu.memory_space<vmem>>, vector<1x32x32xf32>
    %9 = vector.shape_cast %8 : vector<1x32x32xf32> to vector<32x32xf32>
    %cst = arith.constant dense<0.000000e+00> : vector<16x32xf32>
    %10 = tpu.matmul %1, %9, %cst {dimension_numbers = #tpu.dot_dimension_numbers<[1], [0], [0], [1], [0, 0, 1, 1], [], []>} : vector<16x32xf32>, vector<32x32xf32>, vector<16x32xf32> -> vector<16x32xf32>
    %c0_15 = arith.constant 0 : index
    %c0_16 = arith.constant 0 : index
    %c0_17 = arith.constant 0 : index
    %11 = vector.load %arg10[%c0_15, %c0_16, %c0_17] : memref<1x4x32xf32, #tpu.memory_space<vmem>>, vector<1x4x32xf32>
    %12 = vector.shape_cast %11 : vector<1x4x32xf32> to vector<4x32xf32>
    %c0_18 = arith.constant 0 : index
    %c0_19 = arith.constant 0 : index
    %c0_20 = arith.constant 0 : index
    %13 = vector.load %arg9[%c0_18, %c0_19, %c0_20] : memref<1x32x32xf32, #tpu.memory_space<vmem>>, vector<1x32x32xf32>
    %14 = vector.shape_cast %13 : vector<1x32x32xf32> to vector<32x32xf32>
    %15 = vector.extract_strided_slice %10 {offsets = [0, 0], sizes = [16, 16], strides = [1, 1]} : vector<16x32xf32> to vector<16x16xf32>
    %c0_21 = arith.constant 0 : index
    %c0_22 = arith.constant 0 : index
    %c0_23 = arith.constant 0 : index
    %16 = vector.load %arg7[%c0_21, %c0_22, %c0_23] : memref<1x32x32xf32, #tpu.memory_space<vmem>>, vector<1x32x32xf32>
    %17 = vector.shape_cast %16 : vector<1x32x32xf32> to vector<32x32xf32>
    %18 = vector.extract_strided_slice %14 {offsets = [0, 0], sizes = [16, 32], strides = [1, 1]} : vector<32x32xf32> to vector<16x32xf32>
    %19 = vector.extract_strided_slice %12 {offsets = [0, 0], sizes = [1, 32], strides = [1, 1]} : vector<4x32xf32> to vector<1x32xf32>
    %20 = vector.extract_strided_slice %12 {offsets = [1, 0], sizes = [1, 32], strides = [1, 1]} : vector<4x32xf32> to vector<1x32xf32>
    %cst_24 = arith.constant dense<0.000000e+00> : vector<16x32xf32>
    %21 = tpu.matmul %3, %17, %cst_24 {dimension_numbers = #tpu.dot_dimension_numbers<[1], [0], [0], [1], [0, 0, 1, 1], [], []>} : vector<16x32xf32>, vector<32x32xf32>, vector<16x32xf32> -> vector<16x32xf32>
    %22 = vector.extract_strided_slice %21 {offsets = [0, 0], sizes = [16, 16], strides = [1, 1]} : vector<16x32xf32> to vector<16x16xf32>
    %23 = vector.extract_strided_slice %21 {offsets = [0, 16], sizes = [16, 16], strides = [1, 1]} : vector<16x32xf32> to vector<16x16xf32>
    %24 = vector.extract_strided_slice %15 {offsets = [0, 0], sizes = [16, 8], strides = [1, 1]} : vector<16x16xf32> to vector<16x8xf32>
    %25 = vector.extract_strided_slice %22 {offsets = [0, 0], sizes = [16, 8], strides = [1, 1]} : vector<16x16xf32> to vector<16x8xf32>
    %26 = vector.extract_strided_slice %23 {offsets = [0, 0], sizes = [16, 8], strides = [1, 1]} : vector<16x16xf32> to vector<16x8xf32>
    %cst_25 = arith.constant dense<0.000000e+00> : vector<16x16xf32>
    %27 = tpu.matmul %24, %25, %cst_25 {dimension_numbers = #tpu.dot_dimension_numbers<[1], [1], [0], [0], [0, 0, 1, 0], [], []>} : vector<16x8xf32>, vector<16x8xf32>, vector<16x16xf32> -> vector<16x16xf32>
    %28 = arith.addf %27, %6 : vector<16x16xf32>
    %cst_26 = arith.constant dense<0xFF800000> : vector<16xf32>
    %29 = vector.multi_reduction <maximumf>, %28, %cst_26 [1] : vector<16x16xf32> to vector<16xf32>
    %30 = vector.shape_cast %29 : vector<16xf32> to vector<16x1xf32>
    %31 = vector.broadcast %30 : vector<16x1xf32> to vector<16x16xf32>
    %32 = arith.subf %28, %31 : vector<16x16xf32>
    %33 = math.exp %32 : vector<16x16xf32>
    %cst_27 = arith.constant dense<0.000000e+00> : vector<16xf32>
    %34 = vector.multi_reduction <add>, %33, %cst_27 [1] : vector<16x16xf32> to vector<16xf32>
    %35 = vector.shape_cast %34 : vector<16xf32> to vector<16x1xf32>
    %36 = tpu.reciprocal %35 {approx = true} : vector<16x1xf32> -> vector<16x1xf32>
    %37 = vector.broadcast %36 : vector<16x1xf32> to vector<16x16xf32>
    %38 = arith.mulf %33, %37 : vector<16x16xf32>
    %cst_28 = arith.constant dense<0.000000e+00> : vector<16x8xf32>
    %39 = tpu.matmul %38, %26, %cst_28 {dimension_numbers = #tpu.dot_dimension_numbers<[1], [0], [0], [1], [0, 0, 1, 1], [], []>} : vector<16x16xf32>, vector<16x8xf32>, vector<16x8xf32> -> vector<16x8xf32>
    %40 = vector.extract_strided_slice %15 {offsets = [0, 8], sizes = [16, 8], strides = [1, 1]} : vector<16x16xf32> to vector<16x8xf32>
    %41 = vector.extract_strided_slice %22 {offsets = [0, 8], sizes = [16, 8], strides = [1, 1]} : vector<16x16xf32> to vector<16x8xf32>
    %42 = vector.extract_strided_slice %23 {offsets = [0, 8], sizes = [16, 8], strides = [1, 1]} : vector<16x16xf32> to vector<16x8xf32>
    %cst_29 = arith.constant dense<0.000000e+00> : vector<16x16xf32>
    %43 = tpu.matmul %40, %41, %cst_29 {dimension_numbers = #tpu.dot_dimension_numbers<[1], [1], [0], [0], [0, 0, 1, 0], [], []>} : vector<16x8xf32>, vector<16x8xf32>, vector<16x16xf32> -> vector<16x16xf32>
    %44 = arith.addf %43, %6 : vector<16x16xf32>
    %cst_30 = arith.constant dense<0xFF800000> : vector<16xf32>
    %45 = vector.multi_reduction <maximumf>, %44, %cst_30 [1] : vector<16x16xf32> to vector<16xf32>
    %46 = vector.shape_cast %45 : vector<16xf32> to vector<16x1xf32>
    %47 = vector.broadcast %46 : vector<16x1xf32> to vector<16x16xf32>
    %48 = arith.subf %44, %47 : vector<16x16xf32>
    %49 = math.exp %48 : vector<16x16xf32>
    %cst_31 = arith.constant dense<0.000000e+00> : vector<16xf32>
    %50 = vector.multi_reduction <add>, %49, %cst_31 [1] : vector<16x16xf32> to vector<16xf32>
    %51 = vector.shape_cast %50 : vector<16xf32> to vector<16x1xf32>
    %52 = tpu.reciprocal %51 {approx = true} : vector<16x1xf32> -> vector<16x1xf32>
    %53 = vector.broadcast %52 : vector<16x1xf32> to vector<16x16xf32>
    %54 = arith.mulf %49, %53 : vector<16x16xf32>
    %cst_32 = arith.constant dense<0.000000e+00> : vector<16x8xf32>
    %55 = tpu.matmul %54, %42, %cst_32 {dimension_numbers = #tpu.dot_dimension_numbers<[1], [0], [0], [1], [0, 0, 1, 1], [], []>} : vector<16x16xf32>, vector<16x8xf32>, vector<16x8xf32> -> vector<16x8xf32>
    %56 = tpu.concatenate %39, %55 in 1 : vector<16x8xf32>, vector<16x8xf32> -> vector<16x16xf32>
    %cst_33 = arith.constant dense<0.000000e+00> : vector<16x32xf32>
    %57 = tpu.matmul %56, %18, %cst_33 {dimension_numbers = #tpu.dot_dimension_numbers<[1], [0], [0], [1], [0, 0, 1, 1], [], []>} : vector<16x16xf32>, vector<16x32xf32>, vector<16x32xf32> -> vector<16x32xf32>
    %58 = arith.addf %57, %1 : vector<16x32xf32>
    %cst_34 = arith.constant dense<0.000000e+00> : vector<16xf32>
    %59 = vector.multi_reduction <add>, %58, %cst_34 [1] : vector<16x32xf32> to vector<16xf32>
    %60 = vector.shape_cast %59 : vector<16xf32> to vector<16x1xf32>
    %cst_35 = arith.constant 3.200000e+01 : f32
    %61 = vector.broadcast %cst_35 : f32 to vector<16x1xf32>
    %62 = arith.divf %60, %61 : vector<16x1xf32>
    %63 = vector.broadcast %62 : vector<16x1xf32> to vector<16x32xf32>
    %64 = arith.subf %58, %63 : vector<16x32xf32>
    %65 = arith.mulf %64, %64 : vector<16x32xf32>
    %cst_36 = arith.constant dense<0.000000e+00> : vector<16xf32>
    %66 = vector.multi_reduction <add>, %65, %cst_36 [1] : vector<16x32xf32> to vector<16xf32>
    %67 = vector.shape_cast %66 : vector<16xf32> to vector<16x1xf32>
    %cst_37 = arith.constant 3.200000e+01 : f32
    %68 = vector.broadcast %cst_37 : f32 to vector<16x1xf32>
    %69 = arith.divf %67, %68 : vector<16x1xf32>
    %70 = vector.broadcast %62 : vector<16x1xf32> to vector<16x32xf32>
    %71 = arith.subf %58, %70 : vector<16x32xf32>
    %cst_38 = arith.constant 9.99999997E-7 : f32
    %72 = vector.broadcast %cst_38 : f32 to vector<16x1xf32>
    %73 = arith.addf %69, %72 : vector<16x1xf32>
    %74 = math.rsqrt %73 : vector<16x1xf32>
    %75 = vector.broadcast %74 : vector<16x1xf32> to vector<16x32xf32>
    %76 = arith.mulf %71, %75 : vector<16x32xf32>
    %77 = vector.broadcast %19 : vector<1x32xf32> to vector<16x32xf32>
    %78 = arith.mulf %76, %77 : vector<16x32xf32>
    %79 = vector.broadcast %20 : vector<1x32xf32> to vector<16x32xf32>
    %80 = arith.addf %78, %79 : vector<16x32xf32>
    %81 = vector.extract_strided_slice %10 {offsets = [0, 16], sizes = [16, 16], strides = [1, 1]} : vector<16x32xf32> to vector<16x16xf32>
    %c0_39 = arith.constant 0 : index
    %c0_40 = arith.constant 0 : index
    %c0_41 = arith.constant 0 : index
    %82 = vector.load %arg8[%c0_39, %c0_40, %c0_41] : memref<1x32x32xf32, #tpu.memory_space<vmem>>, vector<1x32x32xf32>
    %83 = vector.shape_cast %82 : vector<1x32x32xf32> to vector<32x32xf32>
    %84 = vector.extract_strided_slice %14 {offsets = [16, 0], sizes = [16, 32], strides = [1, 1]} : vector<32x32xf32> to vector<16x32xf32>
    %85 = vector.extract_strided_slice %12 {offsets = [2, 0], sizes = [1, 32], strides = [1, 1]} : vector<4x32xf32> to vector<1x32xf32>
    %86 = vector.extract_strided_slice %12 {offsets = [3, 0], sizes = [1, 32], strides = [1, 1]} : vector<4x32xf32> to vector<1x32xf32>
    %cst_42 = arith.constant dense<0.000000e+00> : vector<16x32xf32>
    %87 = tpu.matmul %5, %83, %cst_42 {dimension_numbers = #tpu.dot_dimension_numbers<[1], [0], [0], [1], [0, 0, 1, 1], [], []>} : vector<16x32xf32>, vector<32x32xf32>, vector<16x32xf32> -> vector<16x32xf32>
    %88 = vector.extract_strided_slice %87 {offsets = [0, 0], sizes = [16, 16], strides = [1, 1]} : vector<16x32xf32> to vector<16x16xf32>
    %89 = vector.extract_strided_slice %87 {offsets = [0, 16], sizes = [16, 16], strides = [1, 1]} : vector<16x32xf32> to vector<16x16xf32>
    %90 = vector.extract_strided_slice %81 {offsets = [0, 0], sizes = [16, 8], strides = [1, 1]} : vector<16x16xf32> to vector<16x8xf32>
    %91 = vector.extract_strided_slice %88 {offsets = [0, 0], sizes = [16, 8], strides = [1, 1]} : vector<16x16xf32> to vector<16x8xf32>
    %92 = vector.extract_strided_slice %89 {offsets = [0, 0], sizes = [16, 8], strides = [1, 1]} : vector<16x16xf32> to vector<16x8xf32>
    %cst_43 = arith.constant dense<0.000000e+00> : vector<16x16xf32>
    %93 = tpu.matmul %90, %91, %cst_43 {dimension_numbers = #tpu.dot_dimension_numbers<[1], [1], [0], [0], [0, 0, 1, 0], [], []>} : vector<16x8xf32>, vector<16x8xf32>, vector<16x16xf32> -> vector<16x16xf32>
    %94 = arith.addf %93, %6 : vector<16x16xf32>
    %cst_44 = arith.constant dense<0xFF800000> : vector<16xf32>
    %95 = vector.multi_reduction <maximumf>, %94, %cst_44 [1] : vector<16x16xf32> to vector<16xf32>
    %96 = vector.shape_cast %95 : vector<16xf32> to vector<16x1xf32>
    %97 = vector.broadcast %96 : vector<16x1xf32> to vector<16x16xf32>
    %98 = arith.subf %94, %97 : vector<16x16xf32>
    %99 = math.exp %98 : vector<16x16xf32>
    %cst_45 = arith.constant dense<0.000000e+00> : vector<16xf32>
    %100 = vector.multi_reduction <add>, %99, %cst_45 [1] : vector<16x16xf32> to vector<16xf32>
    %101 = vector.shape_cast %100 : vector<16xf32> to vector<16x1xf32>
    %102 = tpu.reciprocal %101 {approx = true} : vector<16x1xf32> -> vector<16x1xf32>
    %103 = vector.broadcast %102 : vector<16x1xf32> to vector<16x16xf32>
    %104 = arith.mulf %99, %103 : vector<16x16xf32>
    %cst_46 = arith.constant dense<0.000000e+00> : vector<16x8xf32>
    %105 = tpu.matmul %104, %92, %cst_46 {dimension_numbers = #tpu.dot_dimension_numbers<[1], [0], [0], [1], [0, 0, 1, 1], [], []>} : vector<16x16xf32>, vector<16x8xf32>, vector<16x8xf32> -> vector<16x8xf32>
    %106 = vector.extract_strided_slice %81 {offsets = [0, 8], sizes = [16, 8], strides = [1, 1]} : vector<16x16xf32> to vector<16x8xf32>
    %107 = vector.extract_strided_slice %88 {offsets = [0, 8], sizes = [16, 8], strides = [1, 1]} : vector<16x16xf32> to vector<16x8xf32>
    %108 = vector.extract_strided_slice %89 {offsets = [0, 8], sizes = [16, 8], strides = [1, 1]} : vector<16x16xf32> to vector<16x8xf32>
    %cst_47 = arith.constant dense<0.000000e+00> : vector<16x16xf32>
    %109 = tpu.matmul %106, %107, %cst_47 {dimension_numbers = #tpu.dot_dimension_numbers<[1], [1], [0], [0], [0, 0, 1, 0], [], []>} : vector<16x8xf32>, vector<16x8xf32>, vector<16x16xf32> -> vector<16x16xf32>
    %110 = arith.addf %109, %6 : vector<16x16xf32>
    %cst_48 = arith.constant dense<0xFF800000> : vector<16xf32>
    %111 = vector.multi_reduction <maximumf>, %110, %cst_48 [1] : vector<16x16xf32> to vector<16xf32>
    %112 = vector.shape_cast %111 : vector<16xf32> to vector<16x1xf32>
    %113 = vector.broadcast %112 : vector<16x1xf32> to vector<16x16xf32>
    %114 = arith.subf %110, %113 : vector<16x16xf32>
    %115 = math.exp %114 : vector<16x16xf32>
    %cst_49 = arith.constant dense<0.000000e+00> : vector<16xf32>
    %116 = vector.multi_reduction <add>, %115, %cst_49 [1] : vector<16x16xf32> to vector<16xf32>
    %117 = vector.shape_cast %116 : vector<16xf32> to vector<16x1xf32>
    %118 = tpu.reciprocal %117 {approx = true} : vector<16x1xf32> -> vector<16x1xf32>
    %119 = vector.broadcast %118 : vector<16x1xf32> to vector<16x16xf32>
    %120 = arith.mulf %115, %119 : vector<16x16xf32>
    %cst_50 = arith.constant dense<0.000000e+00> : vector<16x8xf32>
    %121 = tpu.matmul %120, %108, %cst_50 {dimension_numbers = #tpu.dot_dimension_numbers<[1], [0], [0], [1], [0, 0, 1, 1], [], []>} : vector<16x16xf32>, vector<16x8xf32>, vector<16x8xf32> -> vector<16x8xf32>
    %122 = tpu.concatenate %105, %121 in 1 : vector<16x8xf32>, vector<16x8xf32> -> vector<16x16xf32>
    %cst_51 = arith.constant dense<0.000000e+00> : vector<16x32xf32>
    %123 = tpu.matmul %122, %84, %cst_51 {dimension_numbers = #tpu.dot_dimension_numbers<[1], [0], [0], [1], [0, 0, 1, 1], [], []>} : vector<16x16xf32>, vector<16x32xf32>, vector<16x32xf32> -> vector<16x32xf32>
    %124 = arith.addf %123, %1 : vector<16x32xf32>
    %cst_52 = arith.constant dense<0.000000e+00> : vector<16xf32>
    %125 = vector.multi_reduction <add>, %124, %cst_52 [1] : vector<16x32xf32> to vector<16xf32>
    %126 = vector.shape_cast %125 : vector<16xf32> to vector<16x1xf32>
    %cst_53 = arith.constant 3.200000e+01 : f32
    %127 = vector.broadcast %cst_53 : f32 to vector<16x1xf32>
    %128 = arith.divf %126, %127 : vector<16x1xf32>
    %129 = vector.broadcast %128 : vector<16x1xf32> to vector<16x32xf32>
    %130 = arith.subf %124, %129 : vector<16x32xf32>
    %131 = arith.mulf %130, %130 : vector<16x32xf32>
    %cst_54 = arith.constant dense<0.000000e+00> : vector<16xf32>
    %132 = vector.multi_reduction <add>, %131, %cst_54 [1] : vector<16x32xf32> to vector<16xf32>
    %133 = vector.shape_cast %132 : vector<16xf32> to vector<16x1xf32>
    %cst_55 = arith.constant 3.200000e+01 : f32
    %134 = vector.broadcast %cst_55 : f32 to vector<16x1xf32>
    %135 = arith.divf %133, %134 : vector<16x1xf32>
    %136 = vector.broadcast %128 : vector<16x1xf32> to vector<16x32xf32>
    %137 = arith.subf %124, %136 : vector<16x32xf32>
    %cst_56 = arith.constant 9.99999997E-7 : f32
    %138 = vector.broadcast %cst_56 : f32 to vector<16x1xf32>
    %139 = arith.addf %135, %138 : vector<16x1xf32>
    %140 = math.rsqrt %139 : vector<16x1xf32>
    %141 = vector.broadcast %140 : vector<16x1xf32> to vector<16x32xf32>
    %142 = arith.mulf %137, %141 : vector<16x32xf32>
    %143 = vector.broadcast %85 : vector<1x32xf32> to vector<16x32xf32>
    %144 = arith.mulf %142, %143 : vector<16x32xf32>
    %145 = vector.broadcast %86 : vector<1x32xf32> to vector<16x32xf32>
    %146 = arith.addf %144, %145 : vector<16x32xf32>
    %147 = tpu.concatenate %80, %146 in 1 : vector<16x32xf32>, vector<16x32xf32> -> vector<16x64xf32>
    %cst_57 = arith.constant dense<0.000000e+00> : vector<16x64xf32>
    %148 = tpu.matmul %147, %7, %cst_57 {dimension_numbers = #tpu.dot_dimension_numbers<[1], [0], [0], [1], [0, 0, 1, 1], [], []>} : vector<16x64xf32>, vector<64x64xf32>, vector<16x64xf32> -> vector<16x64xf32>
    %149 = vector.extract_strided_slice %148 {offsets = [0, 0], sizes = [16, 16], strides = [1, 1]} : vector<16x64xf32> to vector<16x16xf32>
    %150 = vector.extract_strided_slice %148 {offsets = [0, 0], sizes = [16, 16], strides = [1, 1]} : vector<16x64xf32> to vector<16x16xf32>
    %151 = vector.extract_strided_slice %148 {offsets = [0, 16], sizes = [16, 16], strides = [1, 1]} : vector<16x64xf32> to vector<16x16xf32>
    %152 = arith.maximumf %149, %151 : vector<16x16xf32>
    %153 = arith.addf %150, %151 : vector<16x16xf32>
    %154 = vector.extract_strided_slice %148 {offsets = [0, 32], sizes = [16, 16], strides = [1, 1]} : vector<16x64xf32> to vector<16x16xf32>
    %155 = arith.maximumf %152, %154 : vector<16x16xf32>
    %156 = arith.addf %153, %154 : vector<16x16xf32>
    %157 = vector.extract_strided_slice %148 {offsets = [0, 48], sizes = [16, 16], strides = [1, 1]} : vector<16x64xf32> to vector<16x16xf32>
    %158 = arith.maximumf %155, %157 : vector<16x16xf32>
    %159 = arith.addf %156, %157 : vector<16x16xf32>
    %cst_58 = arith.constant 2.500000e-01 : f32
    %160 = vector.broadcast %cst_58 : f32 to vector<16x16xf32>
    %161 = arith.mulf %159, %160 : vector<16x16xf32>
    %162 = tpu.concatenate %158, %161 in 1 : vector<16x16xf32>, vector<16x16xf32> -> vector<16x32xf32>
    %c0_59 = arith.constant 0 : index
    %c0_60 = arith.constant 0 : index
    %c0_61 = arith.constant 0 : index
    %163 = vector.load %arg11[%c0_59, %c0_60, %c0_61] : memref<1x32x32xf32, #tpu.memory_space<vmem>>, vector<1x32x32xf32>
    %164 = vector.shape_cast %163 : vector<1x32x32xf32> to vector<32x32xf32>
    %cst_62 = arith.constant dense<0.000000e+00> : vector<16x32xf32>
    %165 = tpu.matmul %162, %164, %cst_62 {dimension_numbers = #tpu.dot_dimension_numbers<[1], [0], [0], [1], [0, 0, 1, 1], [], []>} : vector<16x32xf32>, vector<32x32xf32>, vector<16x32xf32> -> vector<16x32xf32>
    %c0_63 = arith.constant 0 : index
    %c0_64 = arith.constant 0 : index
    %c0_65 = arith.constant 0 : index
    %166 = vector.load %arg12[%c0_63, %c0_64, %c0_65] : memref<1x1x32xf32, #tpu.memory_space<vmem>>, vector<1x1x32xf32>
    %167 = vector.shape_cast %166 : vector<1x1x32xf32> to vector<1x32xf32>
    %168 = vector.broadcast %167 : vector<1x32xf32> to vector<16x32xf32>
    %169 = arith.addf %165, %168 : vector<16x32xf32>
    %cst_66 = arith.constant 0.000000e+00 : f32
    %170 = vector.broadcast %cst_66 : f32 to vector<16x32xf32>
    %171 = arith.maximumf %169, %170 : vector<16x32xf32>
    %c0_67 = arith.constant 0 : index
    %c0_68 = arith.constant 0 : index
    %c0_69 = arith.constant 0 : index
    %172 = vector.load %arg13[%c0_67, %c0_68, %c0_69] : memref<1x16x32xf32, #tpu.memory_space<vmem>>, vector<1x16x32xf32>
    %173 = vector.shape_cast %172 : vector<1x16x32xf32> to vector<16x32xf32>
    %174 = vector.shape_cast %171 : vector<16x32xf32> to vector<1x16x32xf32>
    tpu.vector_store %arg13[%c0_67, %c0_68, %c0_69], %174 {strides = array<i32>} : memref<1x16x32xf32, #tpu.memory_space<vmem>>, vector<1x16x32xf32>,
    return
  }
  func.func @transform_0(%arg0: i32) -> (i32, i32, i32) {
    %c0_i32 = arith.constant 0 : i32
    %c0_i32_0 = arith.constant 0 : i32
    %c0_i32_1 = arith.constant 0 : i32
    return %arg0, %c0_i32, %c0_i32_0 : i32, i32, i32
  }
  func.func @transform_1(%arg0: i32) -> (i32, i32, i32) {
    %c0_i32 = arith.constant 0 : i32
    %c0_i32_0 = arith.constant 0 : i32
    %c0_i32_1 = arith.constant 0 : i32
    return %arg0, %c0_i32, %c0_i32_0 : i32, i32, i32
  }
  func.func @transform_2(%arg0: i32) -> (i32, i32, i32) {
    %c0_i32 = arith.constant 0 : i32
    %c0_i32_0 = arith.constant 0 : i32
    %c0_i32_1 = arith.constant 0 : i32
    return %arg0, %c0_i32, %c0_i32_0 : i32, i32, i32
  }
  func.func @transform_3(%arg0: i32) -> (i32, i32) {
    %c0_i32 = arith.constant 0 : i32
    %c0_i32_0 = arith.constant 0 : i32
    %c0_i32_1 = arith.constant 0 : i32
    return %c0_i32, %c0_i32_0 : i32, i32
  }
  func.func @transform_4(%arg0: i32) -> (i32, i32) {
    %c0_i32 = arith.constant 0 : i32
    %c0_i32_0 = arith.constant 0 : i32
    %c0_i32_1 = arith.constant 0 : i32
    return %c0_i32, %c0_i32_0 : i32, i32
  }
  func.func @transform_5(%arg0: i32) -> (i32, i32, i32) {
    %c0_i32 = arith.constant 0 : i32
    %c0_i32_0 = arith.constant 0 : i32
    %c0_i32_1 = arith.constant 0 : i32
    return %arg0, %c0_i32, %c0_i32_0 : i32, i32, i32
  }
  func.func @transform_6(%arg0: i32) -> (i32, i32, i32) {
    %c0_i32 = arith.constant 0 : i32
    %c0_i32_0 = arith.constant 0 : i32
    %c0_i32_1 = arith.constant 0 : i32
    return %arg0, %c0_i32, %c0_i32_0 : i32, i32, i32
  }
  func.func @transform_7(%arg0: i32) -> (i32, i32, i32) {
    %c0_i32 = arith.constant 0 : i32
    %c0_i32_0 = arith.constant 0 : i32
    %c0_i32_1 = arith.constant 0 : i32
    return %arg0, %c0_i32, %c0_i32_0 : i32, i32, i32
  }
  func.func @transform_8(%arg0: i32) -> (i32, i32, i32) {
    %c0_i32 = arith.constant 0 : i32
    %c0_i32_0 = arith.constant 0 : i32
    %c0_i32_1 = arith.constant 0 : i32
    return %arg0, %c0_i32, %c0_i32_0 : i32, i32, i32
  }
  func.func @transform_9(%arg0: i32) -> (i32, i32, i32) {
    %c0_i32 = arith.constant 0 : i32
    %c0_i32_0 = arith.constant 0 : i32
    %c0_i32_1 = arith.constant 0 : i32
    return %arg0, %c0_i32, %c0_i32_0 : i32, i32, i32
  }
  func.func @transform_10(%arg0: i32) -> (i32, i32, i32) {
    %c0_i32 = arith.constant 0 : i32
    %c0_i32_0 = arith.constant 0 : i32
    %c0_i32_1 = arith.constant 0 : i32
    return %arg0, %c0_i32, %c0_i32_0 : i32, i32, i32
  }
  func.func @transform_11(%arg0: i32) -> (i32, i32, i32) {
    %c0_i32 = arith.constant 0 : i32
    %c0_i32_0 = arith.constant 0 : i32
    %c0_i32_1 = arith.constant 0 : i32
    return %arg0, %c0_i32, %c0_i32_0 : i32, i32, i32
  }
  func.func @transform_12(%arg0: i32) -> (i32, i32, i32) {
    %c0_i32 = arith.constant 0 : i32
    %c0_i32_0 = arith.constant 0 : i32
    %c0_i32_1 = arith.constant 0 : i32
    return %arg0, %c0_i32, %c0_i32_0 : i32, i32, i32
  }
}

</mosaic_0001>

<bundles_post_ra>
// kernel: sub_model_forward.1
= control target key start
LH: loop header
LB: loop body
LE: loop exit
PB: predicated region body
PF: predicated region fallthrough
CT: control target
= control target key end

     0   :  { %s2471_s0 = inlined_call_operand.vmem [shape: f32[3,16,32], index: 0, kind: input, shape index: {}]   ;;  %s2472_s1 = inlined_call_operand.vmem [shape: f32[3,16,32], index: 1, kind: input, shape index: {}]   ;;  %s2473_s2 = inlined_call_operand.vmem [shape: f32[3,16,32], index: 2, kind: input, shape index: {}]   ;;  %s2474_s3 = inlined_call_operand.vmem [shape: f32[16,16], index: 3, kind: input, shape index: {}]   ;;  %s2475_s4 = inlined_call_operand.vmem [shape: f32[64,64], index: 4, kind: input, shape index: {}]   ;;  %s2476_s5 = inlined_call_operand.vmem [shape: f32[3,32,32], index: 5, kind: input, shape index: {}]   ;;  %s2477_s6 = inlined_call_operand.vmem [shape: f32[3,32,32], index: 6, kind: input, shape index: {}]   ;;  %s2478_s7 = inlined_call_operand.hbm [shape: f32[3,32,32], index: 7, kind: input, shape index: {}]   ;;  %s2479_s8 = inlined_call_operand.hbm [shape: f32[3,32,32], index: 8, kind: input, shape index: {}]   ;;  %s2480_s9 = inlined_call_operand.vmem [shape: f32[3,4,32], index: 9, kind: input, shape index: {}]   ;;  %s2481_s10 = inlined_call_operand.hbm [shape: f32[3,32,32], index: 10, kind: input, shape index: {}]   ;;  %s2482_s11 = inlined_call_operand.vmem [shape: f32[3,1,32], index: 11, kind: input, shape index: {}]   ;;  %s2483_s12 = inlined_call_operand.vmem [shape: f32[3,16,32], index: 12, kind: output, shape index: {}]  }
   0x1   :  { %2488 = sst [smem:[#allocation11_spill]] %s2475_s4 }
   0x2   :  { %2489 = sst [smem:[#allocation12_spill]] %s2478_s7 }
   0x3   :  { %2490 = sst [smem:[#allocation13_spill]] %s2479_s8 }
   0x4   :  { %2491 = sst [smem:[#allocation14_spill]] %s2480_s9 }
   0x5   :  { %2492 = sst [smem:[#allocation15_spill]] %s2482_s11 }
   0x6   :  { %2493 = sst [smem:[#allocation16_spill]] %s2483_s12 }
   0x7   :  { %17 = vsyncpa [#allocation3], 0 }
   0x8   :  { %19 = vsyncpa [#allocation3 + $0x1], 0 }
   0x9   :  { %20 = vsyncpa [#allocation5], 0 }
   0xa   :  { %22 = vsyncpa [#allocation5 + $0x1], 0  ;;  %s2061_s21 = smov 0   ;;  %s2063_s22 = smov 0  }
   0xb   :  { %s2065_s23 = smov 0   ;;  %s2067_s24 = smov 0  }
   0xc LB: > { %s2080_s25 = sadd.s32 4294967295, %s1983_s24   ;;  %s2083_s26 = sadd.s32 1, %s1983_s24   ;;  %s1983_s24 = sphi %s2067_s24, %s2507_s24   ;;  %s1979_s23 = sphi %s2065_s23, %s2511_s23   ;;  %s1975_s22 = sphi %s2063_s22, %s2510_s22   ;;  %s1971_s21 = sphi %s2061_s21, %s2509_s21  }
   0xd   : > { %2494 = sst [smem:[#allocation9_spill]] %s2083_s26  ;;  %s204_s27 = ssub.s32 %s1983_s24, %s2083_s26 }
   0xe   : > { %s207_s28 = sadd.s32 1, %s1979_s23  ;;  %p205_p0 = scmp.eq.s32.totalorder %s204_s27, 0 }
   0xf   : > { %p214_p1 = scmp.ne.s32.totalorder %s1979_s23, %s1975_s22  ;;  %p215_p2 = scmp.eq.s32.totalorder %s1983_s24, 0 }
  0x10   : > { %p220_p3 = scmp.ne.s32.totalorder %s1975_s22, %s1971_s21  ;;  %p221_p5 = scmp.eq.s32.totalorder %s2080_s25, 0 }
  0x11   : > { %s2093_s29 = scalar_select %p205_p0, %s1979_s23, %s207_s28  }
  0x12   : > { %p216_p4 = por %p215_p2, %p214_p1  ;;  %p1748_p6 = scmp.lt.s32.totalorder %s1983_s24, 3 }
  0x13   : > { %2495 = sst [smem:[#allocation10_spill]] %s2093_s29  ;;  %p2097_p7 = por %p221_p5, %p220_p3 }
  0x14   : > { %s2484_s13 = sand.u32 1, %s1979_s23   ;;  %s2107_s15 = sshll.u32 %s1983_s24, 5 }
  0x15   : > { %s2104_s14 = sshll.u32 %s2484_s13, 5  ;;  %p2109_p8 = pnand %p1748_p6, %p216_p4 }
  0x16   : > { %s442_s17 = sand.u32 1, %s1983_s24   ;;  %s2498_s8 = sld [smem:[#allocation13_spill]] }
  0x17   : > { %s446_s27 = scalar_lea.vmem [#allocation4], %s2104_s14  ;;  %s2119_s13 = scalar_lea.sflag [#allocation5], %s442_s17 }
  0x18   : > { %s454_s28 = sshll.u32 %s446_s27, 4  ;;  %p1859_p10 = pneg %p2109_p8  ;;  %s455_s28 = int_to_ptr.vmem [resolvable:$true] %s454_s28 }
  0x1c   : > { %s451_s20 = scalar_lea.hbm %s2498_s8, %s2107_s15  ;;  %s1862_s19 = scalar_lea.hbm %s2498_s8, 96 }
  0x1d   : > { %s452_s21 = sshll.u32 %s451_s20, 4  ;;  %s453_s21 = int_to_ptr.hbm [resolvable:$true] %s452_s21 }
  0x1e   : > { %s1855_s29 = sshra.s32 %s453_s21, 4  ;;  %s1856_s29 = int_to_ptr.hbm [resolvable:$true] %s1855_s29 }
  0x1f   : > { %s1857_s26 = scalar_lea.hbm %s1856_s29, 32  ;;  %p1863_p13 = scmp.lt.s32.totalorder %s1856_s29, %s2498_s8 }
  0x20   : > { %p1858_p9 = scmp.ne.s32.totalorder %s1856_s29, %s1857_s26  ;;  %p1864_p0 = scmp.lt.s32.totalorder %s1862_s19, %s1857_s26 }
  0x22   : > { %p1860_p11 = pnand %p1859_p10, %p1858_p9  ;;  %p1865_p1 = por %p1864_p0, %p1863_p13 }
  0x24   : > { %p1861_p12 = pneg %p1860_p11 }
  0x26   : > { %p1866_p2 = pnand %p1865_p1, %p1861_p12 }
  0x28   : > { %1869 = shalt.err (!%p1866_p2)
}
  0x29   : > { %s1985_s17 = smov 128   ;;  %s1986_s11 = smov 8  }
  0x2a   : > { %1744 = dma.hbm_to_vmem [thread:$0]  (!%p2109_p8), %s453_s21, 512, %s455_s28, %s2119_s13, %s1985_s17, %s1985_s17, %s1986_s11  }
  0x2b   : > { %p1662_p3 = scmp.ge.s32.totalorder %s1983_s24, 1  ;;  %p497_p4 = scmp.lt.s32.totalorder %s1983_s24, 4 }
  0x2c   : > { %s2500_s7 = sld [smem:[#allocation12_spill]]  ;;  %s424_s20 = scalar_lea.vmem [#allocation2], %s2104_s14 }
  0x2d   : > { %p2140_p5 = pnand %p1662_p3, %p497_p4  ;;  %s432_s27 = sshll.u32 %s424_s20, 4  ;;  %s433_s27 = int_to_ptr.vmem [resolvable:$true] %s432_s27 }
  0x2e   : > { %s2501_s8 = sand.u32 1, %s1979_s23  }
  0x2f   : > { %s421_s9 = scalar_lea.sflag [#allocation3], %s2501_s8 }
  0x32   : > { %s429_s18 = scalar_lea.hbm %s2500_s7, %s2107_s15  ;;  %s1892_s26 = scalar_lea.hbm %s2500_s7, 96 }
  0x33   : > { %s430_s19 = sshll.u32 %s429_s18, 4  ;;  %s431_s19 = int_to_ptr.hbm [resolvable:$true] %s430_s19 }
  0x34   : > { %s1885_s4 = sshra.s32 %s431_s19, 4  ;;  %s1886_s4 = int_to_ptr.hbm [resolvable:$true] %s1885_s4 }
  0x35   : > { %s1887_s21 = scalar_lea.hbm %s1886_s4, 32  ;;  %p1893_p12 = scmp.lt.s32.totalorder %s1886_s4, %s2500_s7 }
  0x36   : > { %p1888_p6 = scmp.ne.s32.totalorder %s1886_s4, %s1887_s21  ;;  %p1894_p13 = scmp.lt.s32.totalorder %s1892_s26, %s1887_s21 }
  0x38   : > { %p1890_p9 = pnand %p1888_p6, %p1859_p10  ;;  %p1895_p0 = por %p1894_p13, %p1893_p12 }
  0x3a   : > { %p1891_p11 = pneg %p1890_p9 }
  0x3c   : > { %p1896_p1 = pnand %p1895_p0, %p1891_p11 }
  0x3e   : > { %1899 = shalt.err (!%p1896_p1)
}
  0x3f   : > { %1741 = dma.hbm_to_vmem [thread:$0]  (!%p2109_p8), %s431_s19, 512, %s433_s27, %s421_s9, %s1985_s17, %s1985_s17, %s1986_s11  }
  0x40   : > { %s480_s24 = scalar_lea.hbm %s2481_s10, %s2107_s15  ;;  %s475_s29 = scalar_lea.vmem [#allocation6], %s2104_s14 }
  0x41   : > { %s481_s28 = sshll.u32 %s480_s24, 4  ;;  %s483_s4 = sshll.u32 %s475_s29, 4  ;;  %s482_s28 = int_to_ptr.hbm [resolvable:$true] %s481_s28  ;;  %s484_s4 = int_to_ptr.vmem [resolvable:$true] %s483_s4 }
  0x42   : > { %s1915_s21 = sshra.s32 %s482_s28, 4  ;;  %s1922_s9 = scalar_lea.hbm %s2481_s10, 96  ;;  %s1916_s21 = int_to_ptr.hbm [resolvable:$true] %s1915_s21 }
  0x43   : > { %s1917_s26 = scalar_lea.hbm %s1916_s21, 32  ;;  %p1923_p6 = scmp.lt.s32.totalorder %s1916_s21, %s2481_s10 }
  0x44   : > { %p1918_p2 = scmp.ne.s32.totalorder %s1916_s21, %s1917_s26  ;;  %p1924_p9 = scmp.lt.s32.totalorder %s1922_s9, %s1917_s26 }
  0x46   : > { %p1920_p3 = pnand %p1918_p2, %p1859_p10  ;;  %p1925_p11 = por %p1924_p9, %p1923_p6 }
  0x48   : > { %p1921_p4 = pneg %p1920_p3 }
  0x4a   : > { %p1926_p12 = pnand %p1925_p11, %p1921_p4 }
  0x4c   : > { %1929 = shalt.err (!%p1926_p12)
}
  0x4d   : > { %1747 = dma.hbm_to_vmem [thread:$0]  (!%p2109_p8), %s482_s28, 512, %s484_s4, %s2119_s13, %s1985_s17, %s1985_s17, %s1986_s11  }
  0x4e   : > { %501 = sbr.rel (%p2140_p5) target bundleno = 2941 (0xb7d), region = 68  ;;  %s503_s7 = sand.u32 (!%p2140_p5), 1, %s1975_s22  }
  0x4f   : > { %s2188_s14 = sshll.u32 (!%p2140_p5), %s503_s7, 5  ;;  %s504_s15 = scalar_lea.sflag (!%p2140_p5), [#allocation3], %s503_s7 }
  0x50   : > { %s2191_s8 = scalar_lea.vmem (!%p2140_p5), [#allocation2], %s2188_s14 }
  0x53   : > { %1962 = dma.done.wait (%p2097_p7), %s504_s15, 512  }
  0x54   : > { %1964 = vsyncadd (%p2097_p7), %s504_s15, 4294966784  ;;  %s513_s11 = sand.u32 1, %s2080_s25   ;;  %s2199_s16 = scalar_lea.vmem [#allocation4], %s2188_s14 }
  0x55   : > { %s514_s13 = scalar_lea.sflag [#allocation5], %s513_s11 }
  0x56   : > { %1966 = dma.done.wait (%p2097_p7), %s514_s13, 1024  }
  0x57   : > { %1968 = vsyncadd (%p2097_p7), %s514_s13, 4294966272  ;;  %p611_p8 = scmp.lt.s32.totalorder %s2080_s25, 2  ;;  %vm668_vm0 = vcmask 261120   ;;  %vm736_vm1 = vcmask 64512   ;;  %s1987_s7 = smov 120   ;;  %v2256_v21 = vld [vmem:[%s2474_s3] sm:$0xff] }
  0x58   : > { %s1988_s15 = smov 112   ;;  %vm772_vm2 = vcmask 130048   ;;  %v2263_v25 = vld [vmem:[%s2474_s3 + $0x8] sm:$0xff]  ;;  %v1025_v41 = vld [vmem:[%s2191_s8 + $0x18] sm:$0xff]  ;;  %v1024_v42 = vld [vmem:[%s2191_s8 + $0x10] sm:$0xff]  ;;  %s1990_s4 = smov 8  }
  0x59   : > { %s2513_s25 = smov (!%p611_p8, %s2080_s25), 2  ;;  %v1023_v43 = vld [vmem:[%s2191_s8 + $0x8] sm:$0xff]  ;;  %v1022_v44 = vld [vmem:[%s2191_s8] sm:$0xff]  ;;  %s1989_s8 = smov 104  }
  0x5a   : > { %s1725_s17 = sshll.u32 %s2513_s25, 5  ;;  %s2214_s28 = sshll.u32 %s2513_s25, 4 }
  0x5b   : > { %s635_s24 = scalar_lea.vmem %s2477_s6, %s1725_s17  ;;  %s630_s30 = scalar_lea.vmem %s2476_s5, %s1725_s17 }
  0x5c   : > { %v706_v0 = vld [vmem:[%s635_s24 + $0x18] sm:$0xff]  ;;  %v705_v1 = vld [vmem:[%s635_s24 + $0x10] sm:$0xff]  ;;  %v704_v3 = vld [vmem:[%s635_s24 + $0x8] sm:$0xff]  ;;  %s620_s18 = scalar_lea.vmem %s2472_s1, %s2214_s28  ;;  %s615_s27 = scalar_lea.vmem %s2471_s0, %s2214_s28 }
  0x5d   : > { %725 = vmatpush.msra.mxu1 %v706_v0  ;;  %v667_v2 = vld [vmem:[%s630_s30 + $0x18] sm:$0xff]  ;;  %v666_v4 = vld [vmem:[%s630_s30 + $0x10] sm:$0xff]  ;;  %v665_v5 = vld [vmem:[%s630_s30 + $0x8] sm:$0xff]  ;;  %s625_s29 = scalar_lea.vmem %s2473_s2, %s2214_s28  ;;  %s2502_s21 = sld [smem:[#allocation11_spill]] }
  0x5e   : > { %687 = vmatpush.msra.mxu0 %v667_v2  ;;  %1728 = vmatpush.msra.mxu2 %v667_v2  ;;  %v703_v6 = vld [vmem:[%s635_s24] sm:$0xff]  ;;  %v2229_v10 = vld [vmem:[%s615_s27 + $0x8] sm:$0xff]  ;;  %s1676_s24 = sshll.u32 %s2513_s25, 2  ;;  %s527_s11 = scalar_lea.vmem [#allocation6], %s2188_s14 }
  0x5f   : > { %726 = vmatpush.msra.mxu1 %v705_v1  ;;  %v650_v7 = vld [vmem:[%s620_s18] sm:$0xff]  ;;  %v651_v11 = vld [vmem:[%s620_s18 + $0x8] sm:$0xff]  ;;  %s1992_s18 = smov 32   ;;  %s1995_s12 = smov 16  }
  0x60   : > { %688 = vmatpush.msra.mxu0 %v666_v4  ;;  %1729 = vmatpush.msra.mxu2 %v666_v4  ;;  %v664_v8 = vld [vmem:[%s630_s30] sm:$0xff]  ;;  %v653_v50 = vld [vmem:[%s625_s29 + $0x8] sm:$0xff]  ;;  %s2504_s30 = sld [smem:[#allocation14_spill]] }
  0x61   : > { %727 = vmatpush.msra.mxu1 %v704_v3  ;;  %v2227_v9 = vld [vmem:[%s615_s27] sm:$0xff]  ;;  %s1993_s27 = smov 80  }
  0x62   : > { %689 = vmatpush.msra.mxu0 %v665_v5  ;;  %1730 = vmatpush.msra.mxu2 %v665_v5  ;;  %v652_v46 = vld [vmem:[%s625_s29] sm:$0xff] }
  0x63   : > { %728 = vmatpush.msra.mxu1 %v703_v6  ;;  %s2503_s26 = smov %s2502_s21 }
  0x64   : > { %1681 = vmatmul.msk.f32.vlgmr.msra.gmra.mxu1 %vm668_vm0, %v650_v7  ;;  %690 = vmatpush.msra.mxu0 %v664_v8 }
  0x65   : > { %1679 = vmatmul.msk.f32.vlgmr.msra.gmra.mxu0 %vm668_vm0, %v2227_v9  ;;  %1731 = vmatpush.msra.mxu2 %v664_v8 }
  0x66   : > { %1680 = vmatmul.msk.f32.vlgmr.msra.gmra.mxu2 %vm668_vm0, %v2229_v10 }
  0x6c   : > { %1682 = vmatmul.msk.f32.gmra.mxu1 %vm668_vm0, %v651_v11 }
  0xe1   : > { %v730_v12 = vpop.f32.mrf.mxu1 }
  0xe2   : > { %v2244_v15 = vpop.f32.mrf.mxu0 }
  0xe9   : > { %v733_v13 = vpop.f32.mrf.mxu1  ;;  %v2248_v16 = vpop.f32.mrf.mxu2 }
  0xea   : > { %836 = vrot.lane.b32.xlu2 %v733_v13, %s1987_s7  ;;  %1683 = vmatpush.xpose.msk.msrb.mxu2 %vm736_vm1, %v733_v13  ;;  %v2239_v14 = vpack.i.bf16 %v730_v12, %v733_v13 }
  0xec   : > { %1793 = vrot.lane.b32.xlu1 %v2239_v14, %s1988_s15 }
  0xee   : > { %1684 = vmatpush.xpose.msk.msrb.mxu2 %vm736_vm1, %v730_v12 }
  0xf1   : > { %1685 = vmatmul.msk.f32.vlgmr.msrb.gmra.mxu2 %vm736_vm1, %v2244_v15 }
  0xf2   : > { %1044 = vmatpush.msra.mxu2 %v1025_v41 }
  0xf4   : > { %1045 = vmatpush.msra.mxu2 %v1024_v42 }
  0xf6   : > { %1046 = vmatpush.msra.mxu2 %v1023_v43 }
  0xf8   : > { %1047 = vmatpush.msra.mxu2 %v1022_v44 }
  0xf9   : > { %1686 = vmatmul.msk.f32.gmra.mxu2 %vm736_vm1, %v2248_v16 }
 0x101   : > { %1697 = vmatmul.msk.f32.vlgmr.msra.gmra.mxu2 %vm668_vm0, %v652_v46 }
 0x109   : > { %1698 = vmatmul.msk.f32.gmra.mxu2 %vm668_vm0, %v653_v50 }
 0x144   : > { %v837_v20 = vpop.permute.xlu2 %836 }
 0x15e   : > { %v1794_v17 = vpop.permute.xlu1 %1793 }
 0x15f   : > { %v1795_v18 = vunpack.i.l.bf16 %v1794_v17  ;;  %v1796_v19 = vunpack.i.h.bf16 %v1794_v17 }
 0x161   : > { %821 = vmatpush.msra.mxu3 %v1795_v18 }
 0x163   : > { %822 = vmatpush.msra.mxu3 %v1796_v19 }
 0x165   : > { %1689 = vmatpush.xpose.msk.msrb.mxu3 %vm736_vm1, %v837_v20 }
 0x174   : > { %v766_v22 = vpop.f32.mrf.mxu2 }
 0x175   : > { %v767_v23 = vadd.f32 %v766_v22, %v2256_v21 }
 0x177   : > { %v773_v24 = vsel %vm772_vm2, %v767_v23, -inf }
 0x178   : > { %774 = vmax.xlane.f32.xlu0 %v773_v24 }
 0x17c   : > { %v769_v26 = vpop.f32.mrf.mxu2 }
 0x17d   : > { %v770_v27 = vadd.f32 %v769_v26, %v2263_v25 }
 0x17f   : > { %v776_v28 = vsel %vm772_vm2, %v770_v27, -inf }
 0x180   : > { %777 = vmax.xlane.f32.xlu0 %v776_v28 }
 0x184   : > { %v2291_v55 = vpop.f32.mrf.mxu2 }
 0x18c   : > { %v2295_v57 = vpop.f32.mrf.mxu2 }
 0x194   : > { %834 = vrot.lane.b32.xlu0 %v730_v12, %s1987_s7 }
 0x1eb   : > { %v775_v29 = vpop.xlane.xlu0 %774 }
 0x1ec   : > { %v779_v30 = vsub.f32 %v767_v23, %v775_v29 }
 0x1ee   : > { %v781_v31 = vmul.f32 1.442695, %v779_v30 }
 0x1f0   : > { %1813 = vpow2.f32 %v781_v31 }
 0x1f3   : > { %v778_v32 = vpop.xlane.xlu0 %777 }
 0x1f4   : > { %v780_v33 = vsub.f32 %v770_v27, %v778_v32 }
 0x1f6   : > { %v1814_v34 = vpop.eup %1813  ;;  %v783_v35 = vmul.f32 1.442695, %v780_v33  ;;  %v700_v33 = vld [vmem:[%s2199_s16 + $0x8] sm:$0xff] }
 0x1f7   : > { %v785_v36 = vsel %vm772_vm2, %v1814_v34, 0.0  ;;  %956 = vmatpush.msrb.mxu1 %v700_v33  ;;  %v701_v33 = vld [vmem:[%s2199_s16 + $0x10] sm:$0xff] }
 0x1f8   : > { %1815 = vpow2.f32 %v783_v35  ;;  %786 = vadd.xlane.f32.xlu1 %v785_v36 }
 0x1fe   : > { %v1816_v37 = vpop.eup %1815 }
 0x1ff   : > { %v788_v38 = vsel %vm772_vm2, %v1816_v37, 0.0 }
 0x200   : > { %789 = vadd.xlane.f32.xlu2 %v788_v38 }
 0x206   : > { %v835_v39 = vpop.permute.xlu0 %834 }
 0x207   : > { %1690 = vmatpush.xpose.msk.msrb.mxu3 %vm736_vm1, %v835_v39 }
 0x211   : > { %832 = vrot.lane.b32.xlu1 %v2248_v16, %s1987_s7 }
 0x218   : > { %830 = vrot.lane.b32.xlu2 %v2244_v15, %s1987_s7 }
 0x26b   : > { %v787_v40 = vpop.xlane.xlu1 %786 }
 0x26c   : > { %1817 = vrcp.f32 %v787_v40 }
 0x272   : > { %v1818_v45 = vpop.eup %1817 }
 0x273   : > { %v790_v47 = vpop.xlane.xlu2 %789  ;;  %v793_v48 = vmul.f32 %v1818_v45, %v1814_v34  ;;  %v699_v34 = vld [vmem:[%s2199_s16] sm:$0xff] }
 0x274   : > { %1819 = vrcp.f32 %v790_v47  ;;  %957 = vmatpush.msrb.mxu1 %v699_v34 }
 0x275   : > { %1687 = vmatmul.msk.f32.vlgmr.msra.gmra.mxu3 %vm772_vm2, %v793_v48 }
 0x276   : > { %1699 = vmatpush.xpose.msk.msra.mxu3 %vm736_vm1, %v2295_v57 }
 0x27a   : > { %v1820_v49 = vpop.eup %1819  ;;  %1700 = vmatpush.xpose.msk.msra.mxu3 %vm736_vm1, %v2291_v55 }
 0x27b   : > { %v794_v51 = vmul.f32 %v1820_v49, %v1816_v37  ;;  %v831_v52 = vpop.permute.xlu2 %830 }
 0x27d   : > { %1688 = vmatmul.msk.f32.gmra.mxu3 %vm772_vm2, %v794_v51 }
 0x283   : > { %v833_v53 = vpop.permute.xlu1 %832 }
 0x285   : > { %1691 = vmatmul.msk.f32.vlgmr.msrb.gmra.mxu3 %vm736_vm1, %v831_v52 }
 0x28d   : > { %1692 = vmatmul.msk.f32.gmra.mxu3 %vm736_vm1, %v833_v53 }
 0x2f8   : > { %v2289_v54 = vpop.f32.mrf.mxu3 }
 0x300   : > { %v2293_v56 = vpop.f32.mrf.mxu3 }
 0x308   : > { %v863_v58 = vpop.f32.mrf.mxu3 }
 0x309   : > { %v864_v59 = vadd.f32 %v863_v58, %v2256_v21 }
 0x30b   : > { %v869_v60 = vsel %vm772_vm2, %v864_v59, -inf }
 0x30c   : > { %870 = vmax.xlane.f32.xlu0 %v869_v60 }
 0x310   : > { %v866_v61 = vpop.f32.mrf.mxu3 }
 0x311   : > { %v867_v62 = vadd.f32 %v866_v61, %v2263_v25 }
 0x313   : > { %v872_v63 = vsel %vm772_vm2, %v867_v62, -inf }
 0x314   : > { %873 = vmax.xlane.f32.xlu2 %v872_v63 }
 0x320   : > { %1798 = vrot.lane.b32.xlu0 %v2239_v14, %s1989_s8 }
 0x328   : > { %1155 = vrot.lane.b32.xlu0 %v2295_v57, %s1987_s7 }
 0x330   : > { %1153 = vrot.lane.b32.xlu0 %v2291_v55, %s1987_s7  ;;  %s1994_s7 = smov 96  }
 0x338   : > { %1055 = vrot.lane.b32.xlu0 %v2244_v15, %s1988_s15 }
 0x37f   : > { %v871_v0 = vpop.xlane.xlu0 %870 }
 0x380   : > { %v875_v1 = vsub.f32 %v864_v59, %v871_v0 }
 0x382   : > { %v877_v2 = vmul.f32 1.442695, %v875_v1 }
 0x384   : > { %1821 = vpow2.f32 %v877_v2 }
 0x387   : > { %v874_v3 = vpop.xlane.xlu2 %873 }
 0x388   : > { %v876_v4 = vsub.f32 %v867_v62, %v874_v3 }
 0x38a   : > { %v1822_v5 = vpop.eup %1821  ;;  %v879_v6 = vmul.f32 1.442695, %v876_v4 }
 0x38b   : > { %v881_v7 = vsel %vm772_vm2, %v1822_v5, 0.0 }
 0x38c   : > { %1823 = vpow2.f32 %v879_v6  ;;  %882 = vadd.xlane.f32.xlu1 %v881_v7 }
 0x392   : > { %v1824_v8 = vpop.eup %1823  ;;  %v1799_v11 = vpop.permute.xlu0 %1798 }
 0x393   : > { %v884_v12 = vsel %vm772_vm2, %v1824_v8, 0.0  ;;  %v1800_v13 = vunpack.i.l.bf16 %v1799_v11  ;;  %v1801_v14 = vunpack.i.h.bf16 %v1799_v11 }
 0x394   : > { %885 = vadd.xlane.f32.xlu2 %v884_v12 }
 0x395   : > { %917 = vmatpush.msrb.mxu0 %v1800_v13 }
 0x397   : > { %918 = vmatpush.msrb.mxu0 %v1801_v14 }
 0x39a   : > { %v1156_v17 = vpop.permute.xlu0 %1155 }
 0x39b   : > { %1705 = vmatpush.xpose.msk.msra.mxu1 %vm736_vm1, %v1156_v17 }
 0x3a2   : > { %v1154_v18 = vpop.permute.xlu0 %1153 }
 0x3a3   : > { %1706 = vmatpush.xpose.msk.msra.mxu1 %vm736_vm1, %v1154_v18 }
 0x3aa   : > { %v1056_v19 = vpop.permute.xlu0 %1055 }
 0x3ab   : > { %1701 = vmatmul.msk.f32.vlgmr.msra.gmra.mxu3 %vm736_vm1, %v1056_v19 }
 0x3ff   : > { %v883_v20 = vpop.xlane.xlu1 %882 }
 0x400   : > { %1825 = vrcp.f32 %v883_v20 }
 0x406   : > { %v1826_v22 = vpop.eup %1825 }
 0x407   : > { %v886_v23 = vpop.xlane.xlu2 %885  ;;  %v889_v24 = vmul.f32 %v1826_v22, %v1822_v5 }
 0x408   : > { %1827 = vrcp.f32 %v886_v23 }
 0x409   : > { %1693 = vmatmul.msk.f32.vlgmr.msrb.gmra.mxu0 %vm772_vm2, %v889_v24 }
 0x40e   : > { %v1828_v26 = vpop.eup %1827 }
 0x40f   : > { %v890_v27 = vmul.f32 %v1828_v26, %v1824_v8 }
 0x411   : > { %1694 = vmatmul.msk.f32.gmra.mxu0 %vm772_vm2, %v890_v27 }
 0x42e   : > { %v1086_v30 = vpop.f32.mrf.mxu3 }
 0x42f   : > { %v1087_v31 = vadd.f32 %v1086_v30, %v2256_v21 }
 0x431   : > { %v1092_v32 = vsel %vm772_vm2, %v1087_v31, -inf }
 0x486   : > { %v920_v28 = vpop.f32.mrf.mxu0 }
 0x487   : > { %928 = vrot.lane.b32.xlu1 %v920_v28, %s1990_s4 }
 0x48e   : > { %v923_v29 = vpop.f32.mrf.mxu0 }
 0x48f   : > { %1149 = vrot.lane.b32.xlu1 %v2244_v15, %s1989_s8  ;;  %930 = vrot.lane.b32.xlu2 %v923_v29, %s1990_s4  ;;  %v1802_v15 = vpack.i.bf16 %v2291_v55, %v2295_v57 }
 0x497   : > { %1057 = vrot.lane.b32.xlu1 %v2248_v16, %s1988_s15  ;;  %1151 = vrot.lane.b32.xlu2 %v2248_v16, %s1989_s8 }
 0x4c1   : > { %1093 = vmax.xlane.f32.xlu1 %v1092_v32  ;;  %v702_v32 = vld [vmem:[%s2199_s16 + $0x18] sm:$0xff] }
 0x4c2   : > { %1275 = vmatpush.msrb.mxu3 %v702_v32 }
 0x4c4   : > { %1276 = vmatpush.msrb.mxu3 %v701_v33 }
 0x4da   : > { %1803 = vrot.lane.b32.xlu1 %v1802_v15, %s1989_s8 }
 0x4e9   : > { %v931_v36 = vpop.permute.xlu2 %930 }
 0x4ea   : > { %v935_v38 = vsel %vm736_vm1, %v2293_v56, %v931_v36 }
 0x4f1   : > { %v1152_v40 = vpop.permute.xlu2 %1151 }
 0x4f9   : > { %v929_v16 = vpop.permute.xlu1 %928 }
 0x4fa   : > { %v934_v35 = vsel %vm736_vm1, %v2289_v54, %v929_v16 }
 0x4fb   : > { %1695 = vmatmul.msk.f32.vlgmr.msrb.gmra.mxu1 %vm772_vm2, %v934_v35 }
 0x501   : > { %v1150_v37 = vpop.permute.xlu1 %1149 }
 0x503   : > { %1696 = vmatmul.msk.f32.gmra.mxu1 %vm772_vm2, %v935_v38 }
 0x509   : > { %v1058_v39 = vpop.permute.xlu1 %1057 }
 0x50a   : > { %1702 = vmatmul.msk.f32.gmra.mxu3 %vm736_vm1, %v1058_v39 }
 0x50b   : > { %1707 = vmatmul.msk.f32.vlgmr.msra.gmra.mxu1 %vm736_vm1, %v1150_v37 }
 0x513   : > { %1708 = vmatmul.msk.f32.gmra.mxu1 %vm736_vm1, %v1152_v40  ;;  %v1991_v40 = vmov 32.0  }
 0x534   : > { %v1094_v41 = vpop.xlane.xlu1 %1093 }
 0x535   : > { %v1098_v52 = vsub.f32 %v1087_v31, %v1094_v41 }
 0x537   : > { %v1100_v55 = vmul.f32 1.442695, %v1098_v52 }
 0x539   : > { %1829 = vpow2.f32 %v1100_v55 }
 0x53f   : > { %v1830_v58 = vpop.eup %1829 }
 0x54c   : > { %v1804_v42 = vpop.permute.xlu1 %1803 }
 0x54d   : > { %v1805_v43 = vunpack.i.l.bf16 %v1804_v42  ;;  %v1806_v44 = vunpack.i.h.bf16 %v1804_v42 }
 0x54f   : > { %1236 = vmatpush.msrb.mxu2 %v1805_v43 }
 0x551   : > { %1237 = vmatpush.msrb.mxu2 %v1806_v44 }
 0x578   : > { %v2344_v45 = vpop.f32.mrf.mxu1 }
 0x579   : > { %v960_v34 = vadd.f32 %v2344_v45, %v2227_v9 }
 0x580   : > { %v2346_v46 = vpop.f32.mrf.mxu1 }
 0x588   : > { %v1182_v47 = vpop.f32.mrf.mxu1 }
 0x589   : > { %v1183_v48 = vadd.f32 %v1182_v47, %v2256_v21  ;;  %v1104_v21 = vsel %vm772_vm2, %v1830_v58, 0.0 }
 0x58b   : > { %v1188_v49 = vsel %vm772_vm2, %v1183_v48, -inf }
 0x58c   : > { %1189 = vmax.xlane.f32.xlu2 %v1188_v49 }
 0x58d   : > { %v1089_v54 = vpop.f32.mrf.mxu3 }
 0x58e   : > { %v1090_v56 = vadd.f32 %v1089_v54, %v2263_v25 }
 0x590   : > { %v1185_v50 = vpop.f32.mrf.mxu1  ;;  %v1095_v57 = vsel %vm772_vm2, %v1090_v56, -inf }
 0x591   : > { %v1186_v51 = vadd.f32 %v1185_v50, %v2263_v25 }
 0x593   : > { %v1191_v53 = vsel %vm772_vm2, %v1186_v51, -inf }
 0x594   : > { %1192 = vmax.xlane.f32.xlu0 %v1191_v53 }
 0x59c   : > { %1096 = vmax.xlane.f32.xlu0 %v1095_v57 }
 0x5a4   : > { %1105 = vadd.xlane.f32.xlu0 %v1104_v21 }
 0x5ff   : > { %v1190_v59 = vpop.xlane.xlu2 %1189 }
 0x600   : > { %v1194_v60 = vsub.f32 %v1183_v48, %v1190_v59 }
 0x602   : > { %v1196_v61 = vmul.f32 1.442695, %v1194_v60 }
 0x604   : > { %1831 = vpow2.f32 %v1196_v61 }
 0x607   : > { %v1193_v62 = vpop.xlane.xlu0 %1192 }
 0x608   : > { %v1195_v63 = vsub.f32 %v1186_v51, %v1193_v62 }
 0x60a   : > { %v1832_v0 = vpop.eup %1831  ;;  %v1198_v1 = vmul.f32 1.442695, %v1195_v63 }
 0x60b   : > { %v1200_v2 = vsel %vm772_vm2, %v1832_v0, 0.0 }
 0x60c   : > { %1833 = vpow2.f32 %v1198_v1  ;;  %1201 = vadd.xlane.f32.xlu2 %v1200_v2 }
 0x60f   : > { %v1097_v25 = vpop.xlane.xlu0 %1096 }
 0x610   : > { %v1099_v3 = vsub.f32 %v1090_v56, %v1097_v25  ;;  %v963_v56 = vadd.f32 %v2346_v46, %v2229_v10 }
 0x612   : > { %v1834_v4 = vpop.eup %1833  ;;  %v1102_v5 = vmul.f32 1.442695, %v1099_v3  ;;  %v968_v21 = vsel %vm668_vm0, %v963_v56, 0.0 }
 0x613   : > { %v1203_v6 = vsel %vm772_vm2, %v1834_v4, 0.0 }
 0x614   : > { %1835 = vpow2.f32 %v1102_v5  ;;  %1204 = vadd.xlane.f32.xlu2 %v1203_v6 }
 0x617   : > { %v1106_v13 = vpop.xlane.xlu0 %1105 }
 0x61a   : > { %v1836_v7 = vpop.eup %1835 }
 0x61b   : > { %v1107_v8 = vsel %vm772_vm2, %v1836_v7, 0.0 }
 0x61c   : > { %1108 = vadd.xlane.f32.xlu0 %v1107_v8 }
 0x62c   : > { %1808 = vrot.lane.b32.xlu2 %v1802_v15, %s1988_s15  ;;  %v965_v15 = vsel %vm668_vm0, %v960_v34, 0.0 }
 0x67f   : > { %v1202_v11 = vpop.xlane.xlu2 %1201 }
 0x680   : > { %1837 = vrcp.f32 %v1202_v11 }
 0x686   : > { %v1838_v12 = vpop.eup %1837 }
 0x687   : > { %v1208_v14 = vmul.f32 %v1838_v12, %v1832_v0  ;;  %v1205_v17 = vpop.xlane.xlu2 %1204  ;;  %v663_v12 = vld [vmem:[%s2502_s21 + $0x38] sm:$0xff]  ;;  %s639_s21 = scalar_lea.vmem %s2504_s30, %s1676_s24  ;;  %s2506_s24 = sld [smem:[#allocation16_spill]] }
 0x688   : > { %1839 = vrcp.f32 %v1205_v17 }
 0x689   : > { %1709 = vmatmul.msk.f32.vlgmr.msrb.gmra.mxu2 %vm772_vm2, %v1208_v14  ;;  %1841 = vrcp.f32 %v1106_v13  ;;  %v662_v13 = vld [vmem:[%s2503_s26 + $0x30] sm:$0xff]  ;;  %v661_v14 = vld [vmem:[%s2503_s26 + $0x28] sm:$0xff] }
 0x68d   : > { %s647_s29 = scalar_lea.vmem %s2506_s24, %s2214_s28 }
 0x68e   : > { %v1840_v18 = vpop.eup %1839 }
 0x68f   : > { %v1109_v19 = vpop.xlane.xlu0 %1108  ;;  %v1809_v20 = vpop.permute.xlu2 %1808  ;;  %v1209_v22 = vmul.f32 %v1840_v18, %v1834_v4 }
 0x690   : > { %v1842_v23 = vpop.eup %1841  ;;  %v1810_v24 = vunpack.i.l.bf16 %v1809_v20  ;;  %1843 = vrcp.f32 %v1109_v19  ;;  %v1811_v26 = vunpack.i.h.bf16 %v1809_v20  ;;  %v660_v19 = vld [vmem:[%s2503_s26 + $0x20] sm:$0xff] }
 0x691   : > { %1710 = vmatmul.msk.f32.gmra.mxu2 %vm772_vm2, %v1209_v22  ;;  %v1112_v27 = vmul.f32 %v1842_v23, %v1830_v58  ;;  %1845 = vrcp.f32 %v1991_v40  ;;  %v659_v23 = vld [vmem:[%s2503_s26 + $0x18] sm:$0xff] }
 0x692   : > { %1140 = vmatpush.msra.mxu0 %v1810_v24 }
 0x694   : > { %1141 = vmatpush.msra.mxu0 %v1811_v26  ;;  %v658_v26 = vld [vmem:[%s2503_s26 + $0x10] sm:$0xff] }
 0x695   : > { %1703 = vmatmul.msk.f32.vlgmr.msra.gmra.mxu0 %vm772_vm2, %v1112_v27 }
 0x696   : > { %v1844_v28 = vpop.eup %1843  ;;  %1359 = vmatpush.msrb.mxu0 %v663_v12 }
 0x697   : > { %v1113_v29 = vmul.f32 %v1844_v28, %v1836_v7  ;;  %v1846_v41 = vpop.eup %1845  ;;  %v657_v28 = vld [vmem:[%s2503_s26 + $0x8] sm:$0xff] }
 0x698   : > { %v972_v42 = vmul.f32 32.0, %v1846_v41  ;;  %vm976_vm3 = vweird.f32 %v1846_v41  ;;  %1360 = vmatpush.msrb.mxu0 %v662_v13 }
 0x69a   : > { %v973_v43 = vsub.f32 1.0, %v972_v42  ;;  %1361 = vmatpush.msrb.mxu0 %v661_v14 }
 0x69c   : > { %v974_v44 = vmul.f32 %v1846_v41, %v973_v43  ;;  %1362 = vmatpush.msrb.mxu0 %v660_v19  ;;  %v1420_v19 = vld [vmem:[%s527_s11 + $0x10] sm:$0xff] }
 0x69d   : > { %1704 = vmatmul.msk.f32.gmra.mxu0 %vm772_vm2, %v1113_v29 }
 0x69e   : > { %v975_v45 = vadd.f32 %v1846_v41, %v974_v44  ;;  %1363 = vmatpush.msrb.mxu0 %v659_v23 }
 0x6a0   : > { %v2374_v47 = vsel %vm976_vm3, %v1846_v41, %v975_v45  ;;  %1364 = vmatpush.msrb.mxu0 %v658_v26 }
 0x6a2   : > { %1365 = vmatpush.msrb.mxu0 %v657_v28 }
 0x70c   : > { %v1239_v30 = vpop.f32.mrf.mxu2 }
 0x70d   : > { %1247 = vrot.lane.b32.xlu0 %v1239_v30, %s1990_s4 }
 0x712   : > { %v1143_v16 = vpop.f32.mrf.mxu0 }
 0x714   : > { %v1242_v31 = vpop.f32.mrf.mxu2 }
 0x715   : > { %1249 = vrot.lane.b32.xlu1 %v1242_v31, %s1990_s4 }
 0x71a   : > { %v1146_v37 = vpop.f32.mrf.mxu0 }
 0x737   : > { %966 = vadd.xlane.f32.xlu0 %v965_v15 }
 0x77f   : > { %v1248_v35 = vpop.permute.xlu0 %1247 }
 0x780   : > { %v1253_v36 = vsel %vm736_vm1, %v1143_v16, %v1248_v35 }
 0x781   : > { %1711 = vmatmul.msk.f32.vlgmr.msrb.gmra.mxu3 %vm772_vm2, %v1253_v36 }
 0x787   : > { %v1250_v38 = vpop.permute.xlu1 %1249 }
 0x788   : > { %v1254_v39 = vsel %vm736_vm1, %v1146_v37, %v1250_v38  ;;  %vm1344_vm1 = vcmask 523264  }
 0x789   : > { %1712 = vmatmul.msk.f32.gmra.mxu3 %vm772_vm2, %v1254_v39 }
 0x7aa   : > { %v967_v48 = vpop.xlane.xlu0 %966 }
 0x7ab   : > { %v978_v49 = vmul.f32 %v2374_v47, %v967_v48 }
 0x7ad   : > { %v2377_v50 = vsub.f32 %v960_v34, %v978_v49  ;;  %v2426_v34 = vld [vmem:[%s639_s21] sm:$0xf] }
 0x7ae   : > { %v1328_v15 = vperm.slane %v2426_v34, 2  ;;  %v1331_v37 = vperm.slane %v2426_v34, 3 }
 0x7af   : > { %v982_v51 = vmul.f32 %v2377_v50, %v2377_v50 }
 0x7b1   : > { %v984_v52 = vsel %vm668_vm0, %v982_v51, 0.0 }
 0x7b2   : > { %985 = vadd.xlane.f32.xlu0 %v984_v52 }
 0x804   : > { %v1278_v53 = vpop.f32.mrf.mxu3 }
 0x805   : > { %v1279_v54 = vadd.f32 %v1278_v53, %v2227_v9 }
 0x807   : > { %v1284_v55 = vsel %vm668_vm0, %v1279_v54, 0.0 }
 0x808   : > { %1285 = vadd.xlane.f32.xlu1 %v1284_v55 }
 0x80c   : > { %v1281_v57 = vpop.f32.mrf.mxu3 }
 0x80d   : > { %v1282_v58 = vadd.f32 %v1281_v57, %v2229_v10 }
 0x80f   : > { %v1287_v59 = vsel %vm668_vm0, %v1282_v58, 0.0 }
 0x810   : > { %969 = vadd.xlane.f32.xlu1 %v968_v21  ;;  %1288 = vadd.xlane.f32.xlu2 %v1287_v59 }
 0x825   : > { %v986_v49 = vpop.xlane.xlu0 %985 }
 0x826   : > { %v990_v51 = vmul.f32 %v986_v49, %v2374_v47 }
 0x828   : > { %v992_v52 = vadd.f32 1e-06, %v990_v51 }
 0x82a   : > { %vm1000_vm11 = vweird.f32 %v992_v52 }
 0x87b   : > { %v1286_v60 = vpop.xlane.xlu1 %1285 }
 0x87c   : > { %v1290_v61 = vmul.f32 %v1286_v60, %v2374_v47 }
 0x87e   : > { %v1292_v62 = vsub.f32 %v1279_v54, %v1290_v61 }
 0x880   : > { %v1294_v9 = vmul.f32 %v1292_v62, %v1292_v62 }
 0x882   : > { %v1296_v63 = vsel %vm668_vm0, %v1294_v9, 0.0 }
 0x883   : > { %v970_v0 = vpop.xlane.xlu1 %969  ;;  %1297 = vadd.xlane.f32.xlu2 %v1296_v63  ;;  %v1289_v1 = vpop.xlane.xlu2 %1288 }
 0x884   : > { %v979_v46 = vmul.f32 %v2374_v47, %v970_v0  ;;  %v1291_v10 = vmul.f32 %v1289_v1, %v2374_v47 }
 0x886   : > { %v2393_v2 = vsub.f32 %v963_v56, %v979_v46  ;;  %v1293_v25 = vsub.f32 %v1282_v58, %v1291_v10  ;;  %v656_v58 = vld [vmem:[%s2503_s26] sm:$0xff]  ;;  %v1016_v10 = vperm.slane %v2426_v34, 0 }
 0x887   : > { %1366 = vmatpush.msrb.mxu0 %v656_v58 }
 0x888   : > { %v983_v3 = vmul.f32 %v2393_v2, %v2393_v2  ;;  %v1295_v4 = vmul.f32 %v1293_v25, %v1293_v25 }
 0x88a   : > { %v987_v5 = vsel %vm668_vm0, %v983_v3, 0.0  ;;  %v1299_v6 = vsel %vm668_vm0, %v1295_v4, 0.0  ;;  %v1019_v4 = vperm.slane %v2426_v34, 1 }
 0x88b   : > { %988 = vadd.xlane.f32.xlu2 %v987_v5  ;;  %1300 = vadd.xlane.f32.xlu1 %v1299_v6 }
 0x8f6   : > { %v1298_v7 = vpop.xlane.xlu2 %1297 }
 0x8f7   : > { %v1302_v8 = vmul.f32 %v1298_v7, %v2374_v47 }
 0x8f9   : > { %v1304_v11 = vadd.f32 1e-06, %v1302_v8 }
 0x8fb   : > { %1847 = vrsqrt.f32 %v1304_v11  ;;  %vm1312_vm5 = vweird.f32 %v1304_v11 }
 0x8fe   : > { %v1301_v17 = vpop.xlane.xlu1 %1300  ;;  %v989_v53 = vpop.xlane.xlu2 %988 }
 0x8ff   : > { %v1303_v18 = vmul.f32 %v1301_v17, %v2374_v47  ;;  %v991_v54 = vmul.f32 %v989_v53, %v2374_v47 }
 0x901   : > { %v1848_v20 = vpop.eup %1847  ;;  %v1305_v22 = vadd.f32 1e-06, %v1303_v18  ;;  %v993_v55 = vadd.f32 1e-06, %v991_v54  ;;  %v1421_v18 = vld [vmem:[%s527_s11 + $0x18] sm:$0xff] }
 0x902   : > { %v1307_v24 = vmul.f32 %v1848_v20, %v1304_v11  ;;  %vm1313_vm4 = vweird.f32 %v1848_v20  ;;  %1444 = vmatpush.msrb.mxu1 %v1421_v18 }
 0x903   : > { %1849 = vrsqrt.f32 %v1305_v22  ;;  %vm1314_vm6 = vmor %vm1312_vm5, %vm1313_vm4  ;;  %vm1322_vm8 = vweird.f32 %v1305_v22  ;;  %vm1010_vm14 = vweird.f32 %v993_v55 }
 0x904   : > { %v1308_v27 = vmul.f32 %v1848_v20, %v1307_v24  ;;  %1851 = vrsqrt.f32 %v992_v52  ;;  %1445 = vmatpush.msrb.mxu1 %v1420_v19 }
 0x905   : > { %1853 = vrsqrt.f32 %v993_v55 }
 0x906   : > { %v1309_v29 = vmul.f32 0.5, %v1308_v27 }
 0x908   : > { %v1310_v30 = vsub.f32 1.5, %v1309_v29 }
 0x909   : > { %v1850_v31 = vpop.eup %1849 }
 0x90a   : > { %v1311_v32 = vmul.f32 %v1848_v20, %v1310_v30  ;;  %v1317_v33 = vmul.f32 %v1850_v31, %v1305_v22  ;;  %vm1323_vm7 = vweird.f32 %v1850_v31  ;;  %v1852_v56 = vpop.eup %1851 }
 0x90b   : > { %vm1324_vm9 = vmor %vm1322_vm8, %vm1323_vm7  ;;  %v995_v57 = vmul.f32 %v1852_v56, %v992_v52  ;;  %v1854_v59 = vpop.eup %1853  ;;  %vm1001_vm10 = vweird.f32 %v1852_v56 }
 0x90c   : > { %v1315_v16 = vsel %vm1314_vm6, %v1848_v20, %v1311_v32  ;;  %v1318_v35 = vmul.f32 %v1850_v31, %v1317_v33  ;;  %v1005_v61 = vmul.f32 %v1854_v59, %v993_v55  ;;  %vm1002_vm12 = vmor %vm1000_vm11, %vm1001_vm10  ;;  %vm1011_vm13 = vweird.f32 %v1854_v59  ;;  %v1419_v20 = vld [vmem:[%s527_s11 + $0x8] sm:$0xff] }
 0x90d   : > { %v1326_v36 = vmul.f32 %v1315_v16, %v1292_v62  ;;  %v996_v21 = vmul.f32 %v1852_v56, %v995_v57  ;;  %vm1012_vm15 = vmor %vm1010_vm14, %vm1011_vm13  ;;  %1446 = vmatpush.msrb.mxu1 %v1419_v20 }
 0x90e   : > { %v1319_v38 = vmul.f32 0.5, %v1318_v35  ;;  %v1006_v9 = vmul.f32 %v1854_v59, %v1005_v61 }
 0x90f   : > { %v1329_v39 = vmul.f32 %v1328_v15, %v1326_v36  ;;  %v997_v60 = vmul.f32 0.5, %v996_v21 }
 0x910   : > { %v1320_v40 = vsub.f32 1.5, %v1319_v38  ;;  %v1007_v0 = vmul.f32 0.5, %v1006_v9  ;;  %v1418_v38 = vld [vmem:[%s527_s11] sm:$0xff] }
 0x911   : > { %v1332_v41 = vadd.f32 %v1331_v37, %v1329_v39  ;;  %v998_v62 = vsub.f32 1.5, %v997_v60  ;;  %1447 = vmatpush.msrb.mxu1 %v1418_v38 }
 0x912   : > { %v1321_v42 = vmul.f32 %v1850_v31, %v1320_v40  ;;  %v1008_v1 = vsub.f32 1.5, %v1007_v0 }
 0x913   : > { %1336 = vrot.lane.b32.xlu1 %v1332_v41, %s1992_s18  ;;  %v999_v63 = vmul.f32 %v1852_v56, %v998_v62 }
 0x914   : > { %v1325_v43 = vsel %vm1324_vm9, %v1850_v31, %v1321_v42 }
 0x915   : > { %v1327_v44 = vmul.f32 %v1325_v43, %v1293_v25  ;;  %v1003_v47 = vsel %vm1002_vm12, %v1852_v56, %v999_v63  ;;  %v1009_v25 = vmul.f32 %v1854_v59, %v1008_v1 }
 0x916   : > { %v1014_v46 = vmul.f32 %v1003_v47, %v2377_v50 }
 0x917   : > { %v1330_v45 = vmul.f32 %v1328_v15, %v1327_v44  ;;  %v1013_v5 = vsel %vm1012_vm15, %v1854_v59, %v1009_v25 }
 0x918   : > { %v1017_v3 = vmul.f32 %v1016_v10, %v1014_v46  ;;  %v1015_v6 = vmul.f32 %v1013_v5, %v2393_v2 }
 0x919   : > { %v1333_v48 = vadd.f32 %v1331_v37, %v1330_v45 }
 0x91a   : > { %v1020_v7 = vadd.f32 %v1019_v4, %v1017_v3  ;;  %v1018_v50 = vmul.f32 %v1016_v10, %v1015_v6 }
 0x91b   : > { %1338 = vrot.lane.b32.xlu0 %v1333_v48, %s1992_s18 }
 0x91c   : > { %v1021_v12 = vadd.f32 %v1019_v4, %v1018_v50 }
 0x985   : > { %v1337_v8 = vpop.permute.xlu1 %1336 }
 0x986   : > { %v1342_v11 = vsel %vm668_vm0, %v1020_v7, %v1337_v8 }
 0x987   : > { %1713 = vmatmul.msk.f32.vlgmr.msrb.gmra.mxu0 %vm1344_vm1, %v1342_v11 }
 0x98d   : > { %v1339_v13 = vpop.permute.xlu0 %1338 }
 0x98e   : > { %v1343_v14 = vsel %vm668_vm0, %v1021_v12, %v1339_v13 }
 0x98f   : > { %1714 = vmatmul.msk.f32.gmra.mxu0 %vm1344_vm1, %v1343_v14 }
 0xa04   : > { %v1368_v17 = vpop.f32.mrf.mxu0 }
 0xa05   : > { %1396 = vrot.lane.b32.xlu1 %v1368_v17, %s1993_s27  ;;  %1386 = vrot.lane.b32.xlu0 %v1368_v17, %s1994_s7 }
 0xa06   : > { %1376 = vrot.lane.b32.xlu2 %v1368_v17, %s1988_s15 }
 0xa0c   : > { %v1371_v2 = vpop.f32.mrf.mxu0 }
 0xa0d   : > { %1398 = vrot.lane.b32.xlu1 %v1371_v2, %s1993_s27  ;;  %1388 = vrot.lane.b32.xlu0 %v1371_v2, %s1994_s7 }
 0xa0e   : > { %1378 = vrot.lane.b32.xlu2 %v1371_v2, %s1988_s15  ;;  %s2505_s15 = sld [smem:[#allocation15_spill]] }
 0xa14   : > { %s642_s14 = scalar_lea.vmem %s2505_s15, %s2513_s25 }
 0xa15   : > { %v1812_v48 = vld [vmem:[%s642_s14] ss:$0 sm:$0xff] }
 0xa60   : > { %v1377_v22 = vpop.permute.xlu2 %1376 }
 0xa61   : > { %v1382_v23 = vmax.f32 %v1368_v17, %v1377_v22  ;;  %v1384_v24 = vadd.f32 %v1377_v22, %v1368_v17 }
 0xa68   : > { %v1379_v32 = vpop.permute.xlu2 %1378 }
 0xa69   : > { %v1385_v34 = vadd.f32 %v1379_v32, %v1371_v2  ;;  %v1383_v41 = vmax.f32 %v1371_v2, %v1379_v32 }
 0xa77   : > { %v1397_v26 = vpop.permute.xlu1 %1396  ;;  %v1387_v27 = vpop.permute.xlu0 %1386 }
 0xa78   : > { %v1392_v28 = vmax.f32 %v1382_v23, %v1387_v27  ;;  %v1394_v29 = vadd.f32 %v1387_v27, %v1384_v24 }
 0xa7a   : > { %v1402_v30 = vmax.f32 %v1392_v28, %v1397_v26  ;;  %v1404_v31 = vadd.f32 %v1397_v26, %v1394_v29 }
 0xa7c   : > { %v1406_v33 = vmul.f32 0.25, %v1404_v31 }
 0xa7e   : > { %1410 = vrot.lane.b32.xlu2 %v1406_v33, %s1995_s12 }
 0xa7f   : > { %v1389_v15 = vpop.permute.xlu0 %1388  ;;  %v1399_v35 = vpop.permute.xlu1 %1398 }
 0xa80   : > { %v1395_v16 = vadd.f32 %v1389_v15, %v1385_v34  ;;  %v1393_v42 = vmax.f32 %v1383_v41, %v1389_v15 }
 0xa82   : > { %v1405_v36 = vadd.f32 %v1399_v35, %v1395_v16  ;;  %v1403_v43 = vmax.f32 %v1393_v42, %v1399_v35 }
 0xa84   : > { %v1407_v37 = vmul.f32 0.25, %v1405_v36 }
 0xa86   : > { %1412 = vrot.lane.b32.xlu0 %v1407_v37, %s1995_s12 }
 0xad8   : > { %v1411_v39 = vpop.permute.xlu2 %1410 }
 0xad9   : > { %v1416_v40 = vsel %vm772_vm2, %v1402_v30, %v1411_v39 }
 0xada   : > { %1715 = vmatmul.msk.f32.vlgmr.msrb.gmra.mxu1 %vm668_vm0, %v1416_v40 }
 0xaf8   : > { %v1413_v44 = vpop.permute.xlu0 %1412 }
 0xaf9   : > { %v1417_v45 = vsel %vm772_vm2, %v1403_v43, %v1413_v44 }
 0xafa   : > { %1716 = vmatmul.msk.f32.gmra.mxu1 %vm668_vm0, %v1417_v45 }
 0xb57   : > { %v1449_v49 = vpop.f32.mrf.mxu1 }
 0xb58   : > { %v1450_v51 = vadd.f32 %v1812_v48, %v1449_v49 }
 0xb5a   : > { %v1455_v52 = vmax.f32 %v1450_v51, 0.0 }
 0xb5c   : > { %1457 = vst.msk [vmem:[%s647_s29] sm:$0xff] %vm668_vm0, %v1455_v52 }
 0xb77   : > { %v1452_v53 = vpop.f32.mrf.mxu1 }
 0xb78   : > { %v1453_v54 = vadd.f32 %v1812_v48, %v1452_v53 }
 0xb7a   : > { %v1456_v55 = vmax.f32 %v1453_v54, 0.0 }
 0xb7c   : > { %1458 = vst.msk [vmem:[%s647_s29 + $0x8] sm:$0xff] %vm668_vm0, %v1456_v55 }
 0xb7d PF: > { %s2507_s24 = sld [smem:[#allocation9_spill]]  ;;  %s2509_s21 = smov %s1975_s22 }
 0xb7e   : > { %s2508_s8 = sld [smem:[#allocation10_spill]]  ;;  %s2510_s22 = smov %s1979_s23 }
 0xb83   : > { %p25_p7 = scmp.ge.s32.totalorder %s2507_s24, 5  }
 0xb84   : > { %s2511_s23 = smov %s2508_s8 }
 0xb85   :  { %27 = sbr.rel (!%p25_p7) target bundleno = 12 (0xc), region = 153 }
 0xb8a   :  { %1480 = vsyncpa [#allocation3], 1 }
 0xb8b   :  { %1482 = vsyncpa [#allocation3 + $0x1], 1 }
 0xb8c   :  { %1483 = vsyncpa [#allocation5], 1 }
 0xb8d   :  { %1485 = vsyncpa [#allocation5 + $0x1], 1 }

</bundles_post_ra>
